<compile_context>
chip_gen: v7x
topology: tpu7x:2x2x1
jax: 0.10.0
libtpu: 0.0.40
codegen_flags: <defaults>
</compile_context>

<pallas_src>
import functools
import math

import jax
import jax.numpy as jnp
from jax.experimental import pallas as pl
from jax.experimental.pallas import tpu as pltpu

LANE = 128
VMEM = pl.BlockSpec(memory_space=pltpu.MemorySpace.VMEM)


def _round_up(x, m):
    return ((x + m - 1) // m) * m


# ----------------------------------------------------------------------------
# Fused forward kernel
# ----------------------------------------------------------------------------
def _attention_conv(x_f32, mask, w_all, b_all, *, heads, cp):
    """One TransformerConv layer.  BN / bias / 1/sqrt(d) are already folded
    into the fused (bf16, lane-padded) weight.  w_all stacks [Q | K | V | skip]
    along the output dim, each heads*cp wide; every slice below is 128-lane
    aligned.  mask[dst, src] = True iff edge src -> dst."""
    xb = x_f32.astype(jnp.bfloat16)
    proj = jnp.dot(xb, w_all, preferred_element_type=jnp.float32) + b_all
    hw = heads * cp

    def heads_first(off):                       # (N, H*cp) slab -> (H, N, cp)
        return jnp.stack(
            [proj[:, off + h * cp: off + (h + 1) * cp] for h in range(heads)],
            axis=0).astype(jnp.bfloat16)

    qh, kh, vh = heads_first(0), heads_first(hw), heads_first(2 * hw)
    skip = proj[:, 3 * hw:4 * hw]               # (N, H*cp) f32

    # scale folded into Q; contraction on last dims avoids an explicit k.T
    scores = jnp.einsum('hnd,hmd->hnm', qh, kh,
                        preferred_element_type=jnp.float32)
    scores = jnp.where(mask[None], scores, jnp.float32(-1e30))
    m = jnp.max(scores, axis=-1, keepdims=True)
    p = jnp.where(mask[None], jnp.exp(scores - m), jnp.float32(0.0))
    denom = jnp.sum(p, axis=-1, keepdims=True)
    inv = pl.reciprocal(jnp.where(denom > 0.0, denom, jnp.float32(1.0)),
                        approx=True)
    alpha = (p * inv).astype(jnp.bfloat16)      # rows w/o edges -> exactly 0
    agg = jnp.einsum('hnm,hmd->hnd', alpha, vh,
                     preferred_element_type=jnp.float32)
    agg = jnp.concatenate([agg[h] for h in range(heads)], axis=-1)  # (N, H*cp)
    return agg + skip


def fused_forward_kernel(x_ref, adj_ref, pool_ref, *rest,
                         num_blocks, heads, cp):
    """Whole RealTransformer forward in one kernel invocation."""
    n_params = 4 * num_blocks + 4
    prm = rest[:n_params]
    out_ref = rest[n_params]

    mask = adj_ref[...] > 0.0        # (N, N) bool, computed once, VMEM-resident
    x = x_ref[...]                   # (N, cp) f32, zero-padded lanes
    inv_sqrt2 = jnp.float32(1.0 / math.sqrt(2.0))

    i = 0
    for _ in range(num_blocks):      # static unroll (num_blocks is small)
        h = _attention_conv(x, mask, prm[i][...], prm[i + 1][...],
                            heads=heads, cp=cp)
        h = jnp.maximum(h, 0.0)      # relu(bn1(.)) with bn1 folded into conv1
        h = _attention_conv(h, mask, prm[i + 2][...], prm[i + 3][...],
                            heads=1, cp=cp)
        h = jnp.maximum(h, 0.0)      # relu(bn2(.)) with bn2 folded into conv2
        x = (h + x) * inv_sqrt2      # residual
        i += 4

    w1, b1, w2, b2 = (prm[i][...], prm[i + 1][...],
                      prm[i + 2][...], prm[i + 3][...])
    # global_mean_pool as a dense (G, N) matmul, then the MLP head
    pooled = jnp.dot(pool_ref[...].astype(jnp.bfloat16), x.astype(jnp.bfloat16),
                     preferred_element_type=jnp.float32)
    h1 = jnp.dot(pooled.astype(jnp.bfloat16), w1,
                 preferred_element_type=jnp.float32) + b1
    h1 = jnp.maximum(h1, 0.0)
    out = jnp.dot(h1.astype(jnp.bfloat16), w2,
                  preferred_element_type=jnp.float32) + b2
    out_ref[...] = out.astype(out_ref.dtype)


def real_transformer_forward(x_pad, adj, pool_mat, flat_params, *,
                             num_blocks, heads, cp, nout_p, num_graphs):
    assert len(flat_params) == 4 * num_blocks + 4
    kernel = functools.partial(fused_forward_kernel,
                               num_blocks=num_blocks, heads=heads, cp=cp)
    n_in = 3 + len(flat_params)
    return pl.pallas_call(
        kernel,
        out_shape=jax.ShapeDtypeStruct((num_graphs, nout_p), jnp.float32),
        in_specs=[VMEM] * n_in,
        out_specs=VMEM,
    )(x_pad, adj, pool_mat, *flat_params)


# ----------------------------------------------------------------------------
# Parameter preparation (glue): fold BN / bias / scale, pad to 128 lanes, bf16
# ----------------------------------------------------------------------------
def _fold_bn(bn, eps=1e-5):
    s = bn["gamma"] / jnp.sqrt(bn["var"] + eps)
    t = bn["beta"] - bn["mean"] * s
    return s, t


def _pad_grouped_w(w, gin, pin, gout, pout):
    """Zero-pad (nig*gin, nog*gout) -> (nig*pin, nog*pout), block per group."""
    fin, fout = w.shape
    nig, nog = fin // gin, fout // gout
    w4 = w.reshape(nig, gin, nog, gout)
    wp = jnp.zeros((nig, pin, nog, pout), w.dtype)
    wp = wp.at[:, :gin, :, :gout].set(w4)
    return wp.reshape(nig * pin, nog * pout)


def _pad_grouped_b(b, gout, pout):
    fout = b.shape[-1]
    nog = fout // gout
    b3 = b.reshape(1, nog, gout)
    bp = jnp.zeros((1, nog, pout), b.dtype).at[:, :, :gout].set(b3)
    return bp.reshape(1, nog * pout)


def _prep_tconv(tc, bn, *, in_ch, out_ch, cp):
    """Fold eval-BN + attention scale into one TransformerConv, zero-pad every
    group (input group and per-head output group) to cp lanes, and fuse the
    four projections [Q | K | V | skip] into one weight / one bias."""
    s, t = _fold_bn(bn)                              # (1, heads*out_ch)
    scale = 1.0 / math.sqrt(float(out_ch))
    folded = (
        (tc["wq"] * scale, tc["bq"] * scale),        # 1/sqrt(d) -> q projection
        (tc["wk"],         tc["bk"]),
        (tc["wv"] * s,     tc["bv"] * s),            # BN scale -> value path
        (tc["ws"] * s,     tc["bs"] * s + t),        # BN scale+shift -> skip
    )
    w_parts, b_parts = [], []
    for w, b in folded:
        w_parts.append(_pad_grouped_w(w, in_ch, cp, out_ch, cp))
        b_parts.append(_pad_grouped_b(b, out_ch, cp))
    w_all = jnp.concatenate(w_parts, axis=1).astype(jnp.bfloat16)
    b_all = jnp.concatenate(b_parts, axis=1)         # biases stay f32
    return [w_all, b_all]


def _prep_head(head, *, hidden, nhid, nout, cp, nhid_p, nout_p):
    w1 = _pad_grouped_w(head["w1"], hidden, cp, nhid, nhid_p).astype(jnp.bfloat16)
    b1 = _pad_grouped_b(head["b1"], nhid, nhid_p)
    w2 = _pad_grouped_w(head["w2"], nhid, nhid_p, nout, nout_p).astype(jnp.bfloat16)
    b2 = _pad_grouped_b(head["b2"], nout, nout_p)
    return [w1, b1, w2, b2]


def prepare_params(params, *, num_node_features, hidden, nhid, nout,
                   cp, nhid_p, nout_p):
    flat = []
    fin = num_node_features
    for bp in params["blocks"]:
        flat += _prep_tconv(bp["tc1"], bp["bn1"], in_ch=fin, out_ch=hidden, cp=cp)
        # conv2's input is conv1's (heads x hidden) output: per-head groups.
        flat += _prep_tconv(bp["tc2"], bp["bn2"], in_ch=hidden, out_ch=hidden, cp=cp)
        fin = hidden
    flat += _prep_head(params["head"], hidden=hidden, nhid=nhid, nout=nout,
                       cp=cp, nhid_p=nhid_p, nout_p=nout_p)
    return flat


# ----------------------------------------------------------------------------
# Deterministic raw parameter initialization (matches module structure)
# ----------------------------------------------------------------------------
def _linear_init(key, fin, fout, scale=0.1):
    kw, kb = jax.random.split(key)
    w = (scale * jax.random.normal(kw, (fin, fout))).astype(jnp.float32)
    b = (scale * jax.random.normal(kb, (1, fout))).astype(jnp.float32)
    return w, b


def _tconv_init(key, fin, out_ch, heads):
    ks = jax.random.split(key, 4)
    wq, bq = _linear_init(ks[0], fin, heads * out_ch)
    wk, bk = _linear_init(ks[1], fin, heads * out_ch)
    wv, bv = _linear_init(ks[2], fin, heads * out_ch)
    ws, bs = _linear_init(ks[3], fin, heads * out_ch)
    return dict(wq=wq, bq=bq, wk=wk, bk=bk, wv=wv, bv=bv, ws=ws, bs=bs)


def _bn_init(key, f):
    kg, kb = jax.random.split(key)
    return dict(
        gamma=(1.0 + 0.1 * jax.random.normal(kg, (1, f))).astype(jnp.float32),
        beta=(0.1 * jax.random.normal(kb, (1, f))).astype(jnp.float32),
        mean=jnp.zeros((1, f), jnp.float32),   # running_mean (eval mode)
        var=jnp.ones((1, f), jnp.float32),     # running_var  (eval mode)
    )


def init_params(key, num_node_features, num_blocks, hidden, nout, nhid, heads):
    blocks = []
    fin = num_node_features
    for _ in range(num_blocks):
        key, k1, k2, k3, k4 = jax.random.split(key, 5)
        blocks.append(dict(
            tc1=_tconv_init(k1, fin, hidden, heads),
            bn1=_bn_init(k2, heads * hidden),
            tc2=_tconv_init(k3, heads * hidden, hidden, 1),
            bn2=_bn_init(k4, hidden),
        ))
        fin = hidden
    key, kh1, kh2 = jax.random.split(key, 3)
    w1, b1 = _linear_init(kh1, hidden, nhid)
    w2, b2 = _linear_init(kh2, nhid, nout)
    return dict(blocks=blocks, head=dict(w1=w1, b1=b1, w2=w2, b2=b2))


# ----------------------------------------------------------------------------
# Main
# ----------------------------------------------------------------------------
if __name__ == "__main__":
    # Small shapes; residual requires num_node_features == hidden_channels.
    N = 16            # nodes total (2 graphs x 8 nodes)
    F = 16            # num_node_features == hidden_channels
    num_blocks = 2
    hidden = 16
    heads = 2
    nhid = 32
    nout = 8
    num_graphs = 2

    CP = _round_up(max(F, hidden), LANE)      # 128 (per-head / per-group lanes)
    NHID_P = _round_up(nhid, LANE)            # 128
    NOUT_P = _round_up(nout, LANE)            # 128

    key = jax.random.PRNGKey(0)
    kx, kp = jax.random.split(key)
    x = jax.random.normal(kx, (N, F), dtype=jnp.float32)
    batch = jnp.repeat(jnp.arange(num_graphs), N // num_graphs)

    # Deterministic edge set (directed ring + skip edges within each graph).
    per = N // num_graphs
    src, dst = [], []
    for g in range(num_graphs):
        base = g * per
        for i in range(per):
            src += [base + i, base + (i + 1) % per, base + i]
            dst += [base + (i + 1) % per, base + i, base + (i + 3) % per]
    edge_index = jnp.array([src, dst], dtype=jnp.int32)

    # Dense adjacency mask: adj[dst, src] = 1.0  (glue; DMA'd once per forward).
    adj = jnp.zeros((N, N), jnp.float32).at[edge_index[1], edge_index[0]].set(1.0)

    # global_mean_pool as a (G, N) pooling matrix (glue).
    onehot = jax.nn.one_hot(batch, num_graphs, dtype=jnp.float32).T
    counts = jnp.maximum(onehot.sum(axis=1, keepdims=True), 1.0)
    pool_mat = onehot / counts

    raw_params = init_params(kp, F, num_blocks, hidden, nout, nhid, heads)
    flat_params = prepare_params(raw_params, num_node_features=F, hidden=hidden,
                                 nhid=nhid, nout=nout, cp=CP,
                                 nhid_p=NHID_P, nout_p=NOUT_P)

    # Zero-pad node features to the 128-lane width (glue).
    x_pad = jnp.zeros((N, CP), jnp.float32).at[:, :F].set(x)

    out_p = real_transformer_forward(x_pad, adj, pool_mat, flat_params,
                                     num_blocks=num_blocks, heads=heads, cp=CP,
                                     nout_p=NOUT_P, num_graphs=num_graphs)
    out = out_p[:, :nout]                     # drop lane padding (glue)
    out = jax.block_until_ready(out)
    assert out.shape == (num_graphs, nout)
    assert bool(jnp.all(jnp.isfinite(out)))
    print("KERNEL_OK")
</pallas_src>

<mosaic_0001>
module attributes {stable_mosaic.version = 11 : i64} {
  func.func @fused_forward_kernel(%arg0: memref<16x128xf32, #tpu.memory_space<vmem>>, %arg1: memref<16x16xf32, #tpu.memory_space<vmem>>, %arg2: memref<2x16xf32, #tpu.memory_space<vmem>>, %arg3: memref<128x1024xbf16, #tpu.memory_space<vmem>>, %arg4: memref<1x1024xf32, #tpu.memory_space<vmem>>, %arg5: memref<256x512xbf16, #tpu.memory_space<vmem>>, %arg6: memref<1x512xf32, #tpu.memory_space<vmem>>, %arg7: memref<128x1024xbf16, #tpu.memory_space<vmem>>, %arg8: memref<1x1024xf32, #tpu.memory_space<vmem>>, %arg9: memref<256x512xbf16, #tpu.memory_space<vmem>>, %arg10: memref<1x512xf32, #tpu.memory_space<vmem>>, %arg11: memref<128x128xbf16, #tpu.memory_space<vmem>>, %arg12: memref<1x128xf32, #tpu.memory_space<vmem>>, %arg13: memref<128x128xbf16, #tpu.memory_space<vmem>>, %arg14: memref<1x128xf32, #tpu.memory_space<vmem>>, %arg15: memref<2x128xf32, #tpu.memory_space<vmem>>) attributes {dimension_semantics = [], scalar_prefetch = 0 : i64, scratch_operands = 0 : i64, tpu.core_type = #tpu.core_type<tc>} {
    %c0 = arith.constant 0 : index
    %c0_0 = arith.constant 0 : index
    %0 = vector.load %arg1[%c0, %c0_0] : memref<16x16xf32, #tpu.memory_space<vmem>>, vector<16x16xf32>
    %cst = arith.constant 0.000000e+00 : f32
    %1 = vector.broadcast %cst : f32 to vector<16x16xf32>
    %2 = arith.cmpf ogt, %0, %1 : vector<16x16xf32>
    %c0_1 = arith.constant 0 : index
    %c0_2 = arith.constant 0 : index
    %3 = vector.load %arg0[%c0_1, %c0_2] : memref<16x128xf32, #tpu.memory_space<vmem>>, vector<16x128xf32>
    %c0_3 = arith.constant 0 : index
    %c0_4 = arith.constant 0 : index
    %4 = vector.load %arg3[%c0_3, %c0_4] : memref<128x1024xbf16, #tpu.memory_space<vmem>>, vector<128x1024xbf16>
    %c0_5 = arith.constant 0 : index
    %c0_6 = arith.constant 0 : index
    %5 = vector.load %arg4[%c0_5, %c0_6] : memref<1x1024xf32, #tpu.memory_space<vmem>>, vector<1x1024xf32>
    %6 = arith.truncf %3 : vector<16x128xf32> to vector<16x128xbf16>
    %cst_7 = arith.constant dense<0.000000e+00> : vector<16x1024xf32>
    %7 = tpu.matmul %6, %4, %cst_7 {dimension_numbers = #tpu.dot_dimension_numbers<[1], [0], [0], [1], [0, 0, 1, 1], [], []>} : vector<16x128xbf16>, vector<128x1024xbf16>, vector<16x1024xf32> -> vector<16x1024xf32>
    %8 = vector.broadcast %5 : vector<1x1024xf32> to vector<16x1024xf32>
    %9 = arith.addf %7, %8 : vector<16x1024xf32>
    %10 = vector.extract_strided_slice %9 {offsets = [0, 0], sizes = [16, 128], strides = [1, 1]} : vector<16x1024xf32> to vector<16x128xf32>
    %11 = vector.extract_strided_slice %9 {offsets = [0, 128], sizes = [16, 128], strides = [1, 1]} : vector<16x1024xf32> to vector<16x128xf32>
    %12 = vector.shape_cast %10 : vector<16x128xf32> to vector<1x16x128xf32>
    %13 = vector.shape_cast %11 : vector<16x128xf32> to vector<1x16x128xf32>
    %14 = tpu.concatenate %12, %13 in 0 : vector<1x16x128xf32>, vector<1x16x128xf32> -> vector<2x16x128xf32>
    %15 = arith.truncf %14 : vector<2x16x128xf32> to vector<2x16x128xbf16>
    %16 = vector.extract_strided_slice %9 {offsets = [0, 256], sizes = [16, 128], strides = [1, 1]} : vector<16x1024xf32> to vector<16x128xf32>
    %17 = vector.extract_strided_slice %9 {offsets = [0, 384], sizes = [16, 128], strides = [1, 1]} : vector<16x1024xf32> to vector<16x128xf32>
    %18 = vector.shape_cast %16 : vector<16x128xf32> to vector<1x16x128xf32>
    %19 = vector.shape_cast %17 : vector<16x128xf32> to vector<1x16x128xf32>
    %20 = tpu.concatenate %18, %19 in 0 : vector<1x16x128xf32>, vector<1x16x128xf32> -> vector<2x16x128xf32>
    %21 = arith.truncf %20 : vector<2x16x128xf32> to vector<2x16x128xbf16>
    %22 = vector.extract_strided_slice %9 {offsets = [0, 512], sizes = [16, 128], strides = [1, 1]} : vector<16x1024xf32> to vector<16x128xf32>
    %23 = vector.extract_strided_slice %9 {offsets = [0, 640], sizes = [16, 128], strides = [1, 1]} : vector<16x1024xf32> to vector<16x128xf32>
    %24 = vector.shape_cast %22 : vector<16x128xf32> to vector<1x16x128xf32>
    %25 = vector.shape_cast %23 : vector<16x128xf32> to vector<1x16x128xf32>
    %26 = tpu.concatenate %24, %25 in 0 : vector<1x16x128xf32>, vector<1x16x128xf32> -> vector<2x16x128xf32>
    %27 = arith.truncf %26 : vector<2x16x128xf32> to vector<2x16x128xbf16>
    %28 = vector.extract_strided_slice %9 {offsets = [0, 768], sizes = [16, 256], strides = [1, 1]} : vector<16x1024xf32> to vector<16x256xf32>
    "tpu.trace_start"() <{level = 10 : i32, message = "hnd,hmd->hnm"}> : () -> ()
    %cst_8 = arith.constant dense<0.000000e+00> : vector<2x16x16xf32>
    %29 = tpu.matmul %15, %21, %cst_8 {dimension_numbers = #tpu.dot_dimension_numbers<[2], [2], [1], [1], [0, 0, 0, 1, 1, 1], [0], [0]>} : vector<2x16x128xbf16>, vector<2x16x128xbf16>, vector<2x16x16xf32> -> vector<2x16x16xf32>
    "tpu.trace_stop"() : () -> ()
    %30 = vector.shape_cast %2 : vector<16x16xi1> to vector<1x16x16xi1>
    %cst_9 = arith.constant -1.000000e+30 : f32
    %31 = vector.shape_cast %30 : vector<1x16x16xi1> to vector<1x16x16xi1>
    %32 = vector.broadcast %31 : vector<1x16x16xi1> to vector<2x16x16xi1>
    %33 = vector.broadcast %cst_9 : f32 to vector<2x16x16xf32>
    %34 = arith.select %32, %29, %33 : vector<2x16x16xi1>, vector<2x16x16xf32>
    %cst_10 = arith.constant dense<0xFF800000> : vector<2x16xf32>
    %35 = vector.multi_reduction <maximumf>, %34, %cst_10 [2] : vector<2x16x16xf32> to vector<2x16xf32>
    %36 = vector.shape_cast %35 : vector<2x16xf32> to vector<2x16x1xf32>
    %37 = vector.shape_cast %2 : vector<16x16xi1> to vector<1x16x16xi1>
    %38 = vector.broadcast %36 : vector<2x16x1xf32> to vector<2x16x16xf32>
    %39 = arith.subf %34, %38 : vector<2x16x16xf32>
    %40 = math.exp %39 : vector<2x16x16xf32>
    %cst_11 = arith.constant 0.000000e+00 : f32
    %41 = vector.shape_cast %37 : vector<1x16x16xi1> to vector<1x16x16xi1>
    %42 = vector.broadcast %41 : vector<1x16x16xi1> to vector<2x16x16xi1>
    %43 = vector.broadcast %cst_11 : f32 to vector<2x16x16xf32>
    %44 = arith.select %42, %40, %43 : vector<2x16x16xi1>, vector<2x16x16xf32>
    %cst_12 = arith.constant dense<0.000000e+00> : vector<2x16xf32>
    %45 = vector.multi_reduction <add>, %44, %cst_12 [2] : vector<2x16x16xf32> to vector<2x16xf32>
    %46 = vector.shape_cast %45 : vector<2x16xf32> to vector<2x16x1xf32>
    %cst_13 = arith.constant 0.000000e+00 : f32
    %47 = vector.broadcast %cst_13 : f32 to vector<2x16x1xf32>
    %48 = arith.cmpf ogt, %46, %47 : vector<2x16x1xf32>
    %cst_14 = arith.constant 1.000000e+00 : f32
    %49 = vector.broadcast %cst_14 : f32 to vector<2x16x1xf32>
    %50 = arith.select %48, %46, %49 : vector<2x16x1xi1>, vector<2x16x1xf32>
    %51 = tpu.reciprocal %50 {approx = true} : vector<2x16x1xf32> -> vector<2x16x1xf32>
    %52 = vector.broadcast %51 : vector<2x16x1xf32> to vector<2x16x16xf32>
    %53 = arith.mulf %44, %52 : vector<2x16x16xf32>
    %54 = arith.truncf %53 : vector<2x16x16xf32> to vector<2x16x16xbf16>
    "tpu.trace_start"() <{level = 10 : i32, message = "hnm,hmd->hnd"}> : () -> ()
    %cst_15 = arith.constant dense<0.000000e+00> : vector<2x16x128xf32>
    %55 = tpu.matmul %54, %27, %cst_15 {dimension_numbers = #tpu.dot_dimension_numbers<[2], [1], [1], [2], [0, 0, 0, 1, 1, 2], [0], [0]>} : vector<2x16x16xbf16>, vector<2x16x128xbf16>, vector<2x16x128xf32> -> vector<2x16x128xf32>
    "tpu.trace_stop"() : () -> ()
    %56 = vector.extract_strided_slice %55 {offsets = [0, 0, 0], sizes = [1, 16, 128], strides = [1, 1, 1]} : vector<2x16x128xf32> to vector<1x16x128xf32>
    %57 = vector.shape_cast %56 : vector<1x16x128xf32> to vector<16x128xf32>
    %58 = vector.extract_strided_slice %55 {offsets = [1, 0, 0], sizes = [1, 16, 128], strides = [1, 1, 1]} : vector<2x16x128xf32> to vector<1x16x128xf32>
    %59 = vector.shape_cast %58 : vector<1x16x128xf32> to vector<16x128xf32>
    %60 = tpu.concatenate %57, %59 in 1 : vector<16x128xf32>, vector<16x128xf32> -> vector<16x256xf32>
    %61 = arith.addf %60, %28 : vector<16x256xf32>
    %cst_16 = arith.constant 0.000000e+00 : f32
    %62 = vector.broadcast %cst_16 : f32 to vector<16x256xf32>
    %63 = arith.maximumf %61, %62 : vector<16x256xf32>
    %c0_17 = arith.constant 0 : index
    %c0_18 = arith.constant 0 : index
    %64 = vector.load %arg5[%c0_17, %c0_18] : memref<256x512xbf16, #tpu.memory_space<vmem>>, vector<256x512xbf16>
    %c0_19 = arith.constant 0 : index
    %c0_20 = arith.constant 0 : index
    %65 = vector.load %arg6[%c0_19, %c0_20] : memref<1x512xf32, #tpu.memory_space<vmem>>, vector<1x512xf32>
    %66 = arith.truncf %63 : vector<16x256xf32> to vector<16x256xbf16>
    %cst_21 = arith.constant dense<0.000000e+00> : vector<16x512xf32>
    %67 = tpu.matmul %66, %64, %cst_21 {dimension_numbers = #tpu.dot_dimension_numbers<[1], [0], [0], [1], [0, 0, 1, 1], [], []>} : vector<16x256xbf16>, vector<256x512xbf16>, vector<16x512xf32> -> vector<16x512xf32>
    %68 = vector.broadcast %65 : vector<1x512xf32> to vector<16x512xf32>
    %69 = arith.addf %67, %68 : vector<16x512xf32>
    %70 = vector.extract_strided_slice %69 {offsets = [0, 0], sizes = [16, 128], strides = [1, 1]} : vector<16x512xf32> to vector<16x128xf32>
    %71 = vector.shape_cast %70 : vector<16x128xf32> to vector<1x16x128xf32>
    %72 = arith.truncf %71 : vector<1x16x128xf32> to vector<1x16x128xbf16>
    %73 = vector.extract_strided_slice %69 {offsets = [0, 128], sizes = [16, 128], strides = [1, 1]} : vector<16x512xf32> to vector<16x128xf32>
    %74 = vector.shape_cast %73 : vector<16x128xf32> to vector<1x16x128xf32>
    %75 = arith.truncf %74 : vector<1x16x128xf32> to vector<1x16x128xbf16>
    %76 = vector.extract_strided_slice %69 {offsets = [0, 256], sizes = [16, 128], strides = [1, 1]} : vector<16x512xf32> to vector<16x128xf32>
    %77 = vector.shape_cast %76 : vector<16x128xf32> to vector<1x16x128xf32>
    %78 = arith.truncf %77 : vector<1x16x128xf32> to vector<1x16x128xbf16>
    %79 = vector.extract_strided_slice %69 {offsets = [0, 384], sizes = [16, 128], strides = [1, 1]} : vector<16x512xf32> to vector<16x128xf32>
    "tpu.trace_start"() <{level = 10 : i32, message = "hnd,hmd->hnm"}> : () -> ()
    %cst_22 = arith.constant dense<0.000000e+00> : vector<1x16x16xf32>
    %80 = tpu.matmul %72, %75, %cst_22 {dimension_numbers = #tpu.dot_dimension_numbers<[2], [2], [1], [1], [0, 0, 0, 1, 1, 1], [0], [0]>} : vector<1x16x128xbf16>, vector<1x16x128xbf16>, vector<1x16x16xf32> -> vector<1x16x16xf32>
    "tpu.trace_stop"() : () -> ()
    %81 = vector.shape_cast %2 : vector<16x16xi1> to vector<1x16x16xi1>
    %cst_23 = arith.constant -1.000000e+30 : f32
    %82 = vector.broadcast %cst_23 : f32 to vector<1x16x16xf32>
    %83 = arith.select %81, %80, %82 : vector<1x16x16xi1>, vector<1x16x16xf32>
    %cst_24 = arith.constant dense<0xFF800000> : vector<1x16xf32>
    %84 = vector.multi_reduction <maximumf>, %83, %cst_24 [2] : vector<1x16x16xf32> to vector<1x16xf32>
    %85 = vector.shape_cast %84 : vector<1x16xf32> to vector<1x16x1xf32>
    %86 = vector.shape_cast %2 : vector<16x16xi1> to vector<1x16x16xi1>
    %87 = vector.broadcast %85 : vector<1x16x1xf32> to vector<1x16x16xf32>
    %88 = arith.subf %83, %87 : vector<1x16x16xf32>
    %89 = math.exp %88 : vector<1x16x16xf32>
    %cst_25 = arith.constant 0.000000e+00 : f32
    %90 = vector.broadcast %cst_25 : f32 to vector<1x16x16xf32>
    %91 = arith.select %86, %89, %90 : vector<1x16x16xi1>, vector<1x16x16xf32>
    %cst_26 = arith.constant dense<0.000000e+00> : vector<1x16xf32>
    %92 = vector.multi_reduction <add>, %91, %cst_26 [2] : vector<1x16x16xf32> to vector<1x16xf32>
    %93 = vector.shape_cast %92 : vector<1x16xf32> to vector<1x16x1xf32>
    %cst_27 = arith.constant 0.000000e+00 : f32
    %94 = vector.broadcast %cst_27 : f32 to vector<1x16x1xf32>
    %95 = arith.cmpf ogt, %93, %94 : vector<1x16x1xf32>
    %cst_28 = arith.constant 1.000000e+00 : f32
    %96 = vector.broadcast %cst_28 : f32 to vector<1x16x1xf32>
    %97 = arith.select %95, %93, %96 : vector<1x16x1xi1>, vector<1x16x1xf32>
    %98 = tpu.reciprocal %97 {approx = true} : vector<1x16x1xf32> -> vector<1x16x1xf32>
    %99 = vector.broadcast %98 : vector<1x16x1xf32> to vector<1x16x16xf32>
    %100 = arith.mulf %91, %99 : vector<1x16x16xf32>
    %101 = arith.truncf %100 : vector<1x16x16xf32> to vector<1x16x16xbf16>
    "tpu.trace_start"() <{level = 10 : i32, message = "hnm,hmd->hnd"}> : () -> ()
    %cst_29 = arith.constant dense<0.000000e+00> : vector<1x16x128xf32>
    %102 = tpu.matmul %101, %78, %cst_29 {dimension_numbers = #tpu.dot_dimension_numbers<[2], [1], [1], [2], [0, 0, 0, 1, 1, 2], [0], [0]>} : vector<1x16x16xbf16>, vector<1x16x128xbf16>, vector<1x16x128xf32> -> vector<1x16x128xf32>
    "tpu.trace_stop"() : () -> ()
    %103 = vector.shape_cast %102 : vector<1x16x128xf32> to vector<16x128xf32>
    %104 = arith.addf %103, %79 : vector<16x128xf32>
    %cst_30 = arith.constant 0.000000e+00 : f32
    %105 = vector.broadcast %cst_30 : f32 to vector<16x128xf32>
    %106 = arith.maximumf %104, %105 : vector<16x128xf32>
    %107 = arith.addf %106, %3 : vector<16x128xf32>
    %cst_31 = arith.constant 0.707106769 : f32
    %108 = vector.broadcast %cst_31 : f32 to vector<16x128xf32>
    %109 = arith.mulf %107, %108 : vector<16x128xf32>
    %c0_32 = arith.constant 0 : index
    %c0_33 = arith.constant 0 : index
    %110 = vector.load %arg7[%c0_32, %c0_33] : memref<128x1024xbf16, #tpu.memory_space<vmem>>, vector<128x1024xbf16>
    %c0_34 = arith.constant 0 : index
    %c0_35 = arith.constant 0 : index
    %111 = vector.load %arg8[%c0_34, %c0_35] : memref<1x1024xf32, #tpu.memory_space<vmem>>, vector<1x1024xf32>
    %112 = arith.truncf %109 : vector<16x128xf32> to vector<16x128xbf16>
    %cst_36 = arith.constant dense<0.000000e+00> : vector<16x1024xf32>
    %113 = tpu.matmul %112, %110, %cst_36 {dimension_numbers = #tpu.dot_dimension_numbers<[1], [0], [0], [1], [0, 0, 1, 1], [], []>} : vector<16x128xbf16>, vector<128x1024xbf16>, vector<16x1024xf32> -> vector<16x1024xf32>
    %114 = vector.broadcast %111 : vector<1x1024xf32> to vector<16x1024xf32>
    %115 = arith.addf %113, %114 : vector<16x1024xf32>
    %116 = vector.extract_strided_slice %115 {offsets = [0, 0], sizes = [16, 128], strides = [1, 1]} : vector<16x1024xf32> to vector<16x128xf32>
    %117 = vector.extract_strided_slice %115 {offsets = [0, 128], sizes = [16, 128], strides = [1, 1]} : vector<16x1024xf32> to vector<16x128xf32>
    %118 = vector.shape_cast %116 : vector<16x128xf32> to vector<1x16x128xf32>
    %119 = vector.shape_cast %117 : vector<16x128xf32> to vector<1x16x128xf32>
    %120 = tpu.concatenate %118, %119 in 0 : vector<1x16x128xf32>, vector<1x16x128xf32> -> vector<2x16x128xf32>
    %121 = arith.truncf %120 : vector<2x16x128xf32> to vector<2x16x128xbf16>
    %122 = vector.extract_strided_slice %115 {offsets = [0, 256], sizes = [16, 128], strides = [1, 1]} : vector<16x1024xf32> to vector<16x128xf32>
    %123 = vector.extract_strided_slice %115 {offsets = [0, 384], sizes = [16, 128], strides = [1, 1]} : vector<16x1024xf32> to vector<16x128xf32>
    %124 = vector.shape_cast %122 : vector<16x128xf32> to vector<1x16x128xf32>
    %125 = vector.shape_cast %123 : vector<16x128xf32> to vector<1x16x128xf32>
    %126 = tpu.concatenate %124, %125 in 0 : vector<1x16x128xf32>, vector<1x16x128xf32> -> vector<2x16x128xf32>
    %127 = arith.truncf %126 : vector<2x16x128xf32> to vector<2x16x128xbf16>
    %128 = vector.extract_strided_slice %115 {offsets = [0, 512], sizes = [16, 128], strides = [1, 1]} : vector<16x1024xf32> to vector<16x128xf32>
    %129 = vector.extract_strided_slice %115 {offsets = [0, 640], sizes = [16, 128], strides = [1, 1]} : vector<16x1024xf32> to vector<16x128xf32>
    %130 = vector.shape_cast %128 : vector<16x128xf32> to vector<1x16x128xf32>
    %131 = vector.shape_cast %129 : vector<16x128xf32> to vector<1x16x128xf32>
    %132 = tpu.concatenate %130, %131 in 0 : vector<1x16x128xf32>, vector<1x16x128xf32> -> vector<2x16x128xf32>
    %133 = arith.truncf %132 : vector<2x16x128xf32> to vector<2x16x128xbf16>
    %134 = vector.extract_strided_slice %115 {offsets = [0, 768], sizes = [16, 256], strides = [1, 1]} : vector<16x1024xf32> to vector<16x256xf32>
    "tpu.trace_start"() <{level = 10 : i32, message = "hnd,hmd->hnm"}> : () -> ()
    %cst_37 = arith.constant dense<0.000000e+00> : vector<2x16x16xf32>
    %135 = tpu.matmul %121, %127, %cst_37 {dimension_numbers = #tpu.dot_dimension_numbers<[2], [2], [1], [1], [0, 0, 0, 1, 1, 1], [0], [0]>} : vector<2x16x128xbf16>, vector<2x16x128xbf16>, vector<2x16x16xf32> -> vector<2x16x16xf32>
    "tpu.trace_stop"() : () -> ()
    %136 = vector.shape_cast %2 : vector<16x16xi1> to vector<1x16x16xi1>
    %cst_38 = arith.constant -1.000000e+30 : f32
    %137 = vector.shape_cast %136 : vector<1x16x16xi1> to vector<1x16x16xi1>
    %138 = vector.broadcast %137 : vector<1x16x16xi1> to vector<2x16x16xi1>
    %139 = vector.broadcast %cst_38 : f32 to vector<2x16x16xf32>
    %140 = arith.select %138, %135, %139 : vector<2x16x16xi1>, vector<2x16x16xf32>
    %cst_39 = arith.constant dense<0xFF800000> : vector<2x16xf32>
    %141 = vector.multi_reduction <maximumf>, %140, %cst_39 [2] : vector<2x16x16xf32> to vector<2x16xf32>
    %142 = vector.shape_cast %141 : vector<2x16xf32> to vector<2x16x1xf32>
    %143 = vector.shape_cast %2 : vector<16x16xi1> to vector<1x16x16xi1>
    %144 = vector.broadcast %142 : vector<2x16x1xf32> to vector<2x16x16xf32>
    %145 = arith.subf %140, %144 : vector<2x16x16xf32>
    %146 = math.exp %145 : vector<2x16x16xf32>
    %cst_40 = arith.constant 0.000000e+00 : f32
    %147 = vector.shape_cast %143 : vector<1x16x16xi1> to vector<1x16x16xi1>
    %148 = vector.broadcast %147 : vector<1x16x16xi1> to vector<2x16x16xi1>
    %149 = vector.broadcast %cst_40 : f32 to vector<2x16x16xf32>
    %150 = arith.select %148, %146, %149 : vector<2x16x16xi1>, vector<2x16x16xf32>
    %cst_41 = arith.constant dense<0.000000e+00> : vector<2x16xf32>
    %151 = vector.multi_reduction <add>, %150, %cst_41 [2] : vector<2x16x16xf32> to vector<2x16xf32>
    %152 = vector.shape_cast %151 : vector<2x16xf32> to vector<2x16x1xf32>
    %cst_42 = arith.constant 0.000000e+00 : f32
    %153 = vector.broadcast %cst_42 : f32 to vector<2x16x1xf32>
    %154 = arith.cmpf ogt, %152, %153 : vector<2x16x1xf32>
    %cst_43 = arith.constant 1.000000e+00 : f32
    %155 = vector.broadcast %cst_43 : f32 to vector<2x16x1xf32>
    %156 = arith.select %154, %152, %155 : vector<2x16x1xi1>, vector<2x16x1xf32>
    %157 = tpu.reciprocal %156 {approx = true} : vector<2x16x1xf32> -> vector<2x16x1xf32>
    %158 = vector.broadcast %157 : vector<2x16x1xf32> to vector<2x16x16xf32>
    %159 = arith.mulf %150, %158 : vector<2x16x16xf32>
    %160 = arith.truncf %159 : vector<2x16x16xf32> to vector<2x16x16xbf16>
    "tpu.trace_start"() <{level = 10 : i32, message = "hnm,hmd->hnd"}> : () -> ()
    %cst_44 = arith.constant dense<0.000000e+00> : vector<2x16x128xf32>
    %161 = tpu.matmul %160, %133, %cst_44 {dimension_numbers = #tpu.dot_dimension_numbers<[2], [1], [1], [2], [0, 0, 0, 1, 1, 2], [0], [0]>} : vector<2x16x16xbf16>, vector<2x16x128xbf16>, vector<2x16x128xf32> -> vector<2x16x128xf32>
    "tpu.trace_stop"() : () -> ()
    %162 = vector.extract_strided_slice %161 {offsets = [0, 0, 0], sizes = [1, 16, 128], strides = [1, 1, 1]} : vector<2x16x128xf32> to vector<1x16x128xf32>
    %163 = vector.shape_cast %162 : vector<1x16x128xf32> to vector<16x128xf32>
    %164 = vector.extract_strided_slice %161 {offsets = [1, 0, 0], sizes = [1, 16, 128], strides = [1, 1, 1]} : vector<2x16x128xf32> to vector<1x16x128xf32>
    %165 = vector.shape_cast %164 : vector<1x16x128xf32> to vector<16x128xf32>
    %166 = tpu.concatenate %163, %165 in 1 : vector<16x128xf32>, vector<16x128xf32> -> vector<16x256xf32>
    %167 = arith.addf %166, %134 : vector<16x256xf32>
    %cst_45 = arith.constant 0.000000e+00 : f32
    %168 = vector.broadcast %cst_45 : f32 to vector<16x256xf32>
    %169 = arith.maximumf %167, %168 : vector<16x256xf32>
    %c0_46 = arith.constant 0 : index
    %c0_47 = arith.constant 0 : index
    %170 = vector.load %arg9[%c0_46, %c0_47] : memref<256x512xbf16, #tpu.memory_space<vmem>>, vector<256x512xbf16>
    %c0_48 = arith.constant 0 : index
    %c0_49 = arith.constant 0 : index
    %171 = vector.load %arg10[%c0_48, %c0_49] : memref<1x512xf32, #tpu.memory_space<vmem>>, vector<1x512xf32>
    %172 = arith.truncf %169 : vector<16x256xf32> to vector<16x256xbf16>
    %cst_50 = arith.constant dense<0.000000e+00> : vector<16x512xf32>
    %173 = tpu.matmul %172, %170, %cst_50 {dimension_numbers = #tpu.dot_dimension_numbers<[1], [0], [0], [1], [0, 0, 1, 1], [], []>} : vector<16x256xbf16>, vector<256x512xbf16>, vector<16x512xf32> -> vector<16x512xf32>
    %174 = vector.broadcast %171 : vector<1x512xf32> to vector<16x512xf32>
    %175 = arith.addf %173, %174 : vector<16x512xf32>
    %176 = vector.extract_strided_slice %175 {offsets = [0, 0], sizes = [16, 128], strides = [1, 1]} : vector<16x512xf32> to vector<16x128xf32>
    %177 = vector.shape_cast %176 : vector<16x128xf32> to vector<1x16x128xf32>
    %178 = arith.truncf %177 : vector<1x16x128xf32> to vector<1x16x128xbf16>
    %179 = vector.extract_strided_slice %175 {offsets = [0, 128], sizes = [16, 128], strides = [1, 1]} : vector<16x512xf32> to vector<16x128xf32>
    %180 = vector.shape_cast %179 : vector<16x128xf32> to vector<1x16x128xf32>
    %181 = arith.truncf %180 : vector<1x16x128xf32> to vector<1x16x128xbf16>
    %182 = vector.extract_strided_slice %175 {offsets = [0, 256], sizes = [16, 128], strides = [1, 1]} : vector<16x512xf32> to vector<16x128xf32>
    %183 = vector.shape_cast %182 : vector<16x128xf32> to vector<1x16x128xf32>
    %184 = arith.truncf %183 : vector<1x16x128xf32> to vector<1x16x128xbf16>
    %185 = vector.extract_strided_slice %175 {offsets = [0, 384], sizes = [16, 128], strides = [1, 1]} : vector<16x512xf32> to vector<16x128xf32>
    "tpu.trace_start"() <{level = 10 : i32, message = "hnd,hmd->hnm"}> : () -> ()
    %cst_51 = arith.constant dense<0.000000e+00> : vector<1x16x16xf32>
    %186 = tpu.matmul %178, %181, %cst_51 {dimension_numbers = #tpu.dot_dimension_numbers<[2], [2], [1], [1], [0, 0, 0, 1, 1, 1], [0], [0]>} : vector<1x16x128xbf16>, vector<1x16x128xbf16>, vector<1x16x16xf32> -> vector<1x16x16xf32>
    "tpu.trace_stop"() : () -> ()
    %187 = vector.shape_cast %2 : vector<16x16xi1> to vector<1x16x16xi1>
    %cst_52 = arith.constant -1.000000e+30 : f32
    %188 = vector.broadcast %cst_52 : f32 to vector<1x16x16xf32>
    %189 = arith.select %187, %186, %188 : vector<1x16x16xi1>, vector<1x16x16xf32>
    %cst_53 = arith.constant dense<0xFF800000> : vector<1x16xf32>
    %190 = vector.multi_reduction <maximumf>, %189, %cst_53 [2] : vector<1x16x16xf32> to vector<1x16xf32>
    %191 = vector.shape_cast %190 : vector<1x16xf32> to vector<1x16x1xf32>
    %192 = vector.shape_cast %2 : vector<16x16xi1> to vector<1x16x16xi1>
    %193 = vector.broadcast %191 : vector<1x16x1xf32> to vector<1x16x16xf32>
    %194 = arith.subf %189, %193 : vector<1x16x16xf32>
    %195 = math.exp %194 : vector<1x16x16xf32>
    %cst_54 = arith.constant 0.000000e+00 : f32
    %196 = vector.broadcast %cst_54 : f32 to vector<1x16x16xf32>
    %197 = arith.select %192, %195, %196 : vector<1x16x16xi1>, vector<1x16x16xf32>
    %cst_55 = arith.constant dense<0.000000e+00> : vector<1x16xf32>
    %198 = vector.multi_reduction <add>, %197, %cst_55 [2] : vector<1x16x16xf32> to vector<1x16xf32>
    %199 = vector.shape_cast %198 : vector<1x16xf32> to vector<1x16x1xf32>
    %cst_56 = arith.constant 0.000000e+00 : f32
    %200 = vector.broadcast %cst_56 : f32 to vector<1x16x1xf32>
    %201 = arith.cmpf ogt, %199, %200 : vector<1x16x1xf32>
    %cst_57 = arith.constant 1.000000e+00 : f32
    %202 = vector.broadcast %cst_57 : f32 to vector<1x16x1xf32>
    %203 = arith.select %201, %199, %202 : vector<1x16x1xi1>, vector<1x16x1xf32>
    %204 = tpu.reciprocal %203 {approx = true} : vector<1x16x1xf32> -> vector<1x16x1xf32>
    %205 = vector.broadcast %204 : vector<1x16x1xf32> to vector<1x16x16xf32>
    %206 = arith.mulf %197, %205 : vector<1x16x16xf32>
    %207 = arith.truncf %206 : vector<1x16x16xf32> to vector<1x16x16xbf16>
    "tpu.trace_start"() <{level = 10 : i32, message = "hnm,hmd->hnd"}> : () -> ()
    %cst_58 = arith.constant dense<0.000000e+00> : vector<1x16x128xf32>
    %208 = tpu.matmul %207, %184, %cst_58 {dimension_numbers = #tpu.dot_dimension_numbers<[2], [1], [1], [2], [0, 0, 0, 1, 1, 2], [0], [0]>} : vector<1x16x16xbf16>, vector<1x16x128xbf16>, vector<1x16x128xf32> -> vector<1x16x128xf32>
    "tpu.trace_stop"() : () -> ()
    %209 = vector.shape_cast %208 : vector<1x16x128xf32> to vector<16x128xf32>
    %210 = arith.addf %209, %185 : vector<16x128xf32>
    %cst_59 = arith.constant 0.000000e+00 : f32
    %211 = vector.broadcast %cst_59 : f32 to vector<16x128xf32>
    %212 = arith.maximumf %210, %211 : vector<16x128xf32>
    %213 = arith.addf %212, %109 : vector<16x128xf32>
    %cst_60 = arith.constant 0.707106769 : f32
    %214 = vector.broadcast %cst_60 : f32 to vector<16x128xf32>
    %215 = arith.mulf %213, %214 : vector<16x128xf32>
    %c0_61 = arith.constant 0 : index
    %c0_62 = arith.constant 0 : index
    %216 = vector.load %arg11[%c0_61, %c0_62] : memref<128x128xbf16, #tpu.memory_space<vmem>>, vector<128x128xbf16>
    %c0_63 = arith.constant 0 : index
    %c0_64 = arith.constant 0 : index
    %217 = vector.load %arg12[%c0_63, %c0_64] : memref<1x128xf32, #tpu.memory_space<vmem>>, vector<1x128xf32>
    %c0_65 = arith.constant 0 : index
    %c0_66 = arith.constant 0 : index
    %218 = vector.load %arg13[%c0_65, %c0_66] : memref<128x128xbf16, #tpu.memory_space<vmem>>, vector<128x128xbf16>
    %c0_67 = arith.constant 0 : index
    %c0_68 = arith.constant 0 : index
    %219 = vector.load %arg14[%c0_67, %c0_68] : memref<1x128xf32, #tpu.memory_space<vmem>>, vector<1x128xf32>
    %c0_69 = arith.constant 0 : index
    %c0_70 = arith.constant 0 : index
    %220 = vector.load %arg2[%c0_69, %c0_70] : memref<2x16xf32, #tpu.memory_space<vmem>>, vector<2x16xf32>
    %221 = arith.truncf %220 : vector<2x16xf32> to vector<2x16xbf16>
    %222 = arith.truncf %215 : vector<16x128xf32> to vector<16x128xbf16>
    %cst_71 = arith.constant dense<0.000000e+00> : vector<2x128xf32>
    %223 = tpu.matmul %221, %222, %cst_71 {dimension_numbers = #tpu.dot_dimension_numbers<[1], [0], [0], [1], [0, 0, 1, 1], [], []>} : vector<2x16xbf16>, vector<16x128xbf16>, vector<2x128xf32> -> vector<2x128xf32>
    %224 = arith.truncf %223 : vector<2x128xf32> to vector<2x128xbf16>
    %cst_72 = arith.constant dense<0.000000e+00> : vector<2x128xf32>
    %225 = tpu.matmul %224, %216, %cst_72 {dimension_numbers = #tpu.dot_dimension_numbers<[1], [0], [0], [1], [0, 0, 1, 1], [], []>} : vector<2x128xbf16>, vector<128x128xbf16>, vector<2x128xf32> -> vector<2x128xf32>
    %226 = vector.broadcast %217 : vector<1x128xf32> to vector<2x128xf32>
    %227 = arith.addf %225, %226 : vector<2x128xf32>
    %cst_73 = arith.constant 0.000000e+00 : f32
    %228 = vector.broadcast %cst_73 : f32 to vector<2x128xf32>
    %229 = arith.maximumf %227, %228 : vector<2x128xf32>
    %230 = arith.truncf %229 : vector<2x128xf32> to vector<2x128xbf16>
    %cst_74 = arith.constant dense<0.000000e+00> : vector<2x128xf32>
    %231 = tpu.matmul %230, %218, %cst_74 {dimension_numbers = #tpu.dot_dimension_numbers<[1], [0], [0], [1], [0, 0, 1, 1], [], []>} : vector<2x128xbf16>, vector<128x128xbf16>, vector<2x128xf32> -> vector<2x128xf32>
    %232 = vector.broadcast %219 : vector<1x128xf32> to vector<2x128xf32>
    %233 = arith.addf %231, %232 : vector<2x128xf32>
    %c0_75 = arith.constant 0 : index
    %c0_76 = arith.constant 0 : index
    %234 = vector.load %arg15[%c0_75, %c0_76] : memref<2x128xf32, #tpu.memory_space<vmem>>, vector<2x128xf32>
    tpu.vector_store %arg15[%c0_75, %c0_76], %233 {strides = array<i32>} : memref<2x128xf32, #tpu.memory_space<vmem>>, vector<2x128xf32>,
    return
  }
}

</mosaic_0001>

<bundles_post_ra>
// kernel: tpu_custom_call.1
= control target key start
LH: loop header
LB: loop body
LE: loop exit
PB: predicated region body
PF: predicated region fallthrough
CT: control target
= control target key end

     0   :  { %20 = vsyncpa [#allocation3], 0  ;;  %s4861_s0 = inlined_call_operand.hbm [shape: f32[16,128], index: 0, kind: input, shape index: {}]   ;;  %s4862_s1 = inlined_call_operand.hbm [shape: f32[16,16], index: 1, kind: input, shape index: {}]   ;;  %s4863_s2 = inlined_call_operand.vmem [shape: f32[2,16], index: 2, kind: input, shape index: {}]   ;;  %s4864_s3 = inlined_call_operand.hbm [shape: bf16[128,1024], index: 3, kind: input, shape index: {}]   ;;  %s4865_s4 = inlined_call_operand.vmem [shape: f32[1,1024], index: 4, kind: input, shape index: {}]   ;;  %s4866_s5 = inlined_call_operand.hbm [shape: bf16[256,512], index: 5, kind: input, shape index: {}]   ;;  %s4867_s6 = inlined_call_operand.vmem [shape: f32[1,512], index: 6, kind: input, shape index: {}]   ;;  %s4868_s7 = inlined_call_operand.hbm [shape: bf16[128,1024], index: 7, kind: input, shape index: {}]   ;;  %s4869_s8 = inlined_call_operand.vmem [shape: f32[1,1024], index: 8, kind: input, shape index: {}]   ;;  %s4870_s9 = inlined_call_operand.hbm [shape: bf16[256,512], index: 9, kind: input, shape index: {}]   ;;  %s4871_s10 = inlined_call_operand.vmem [shape: f32[1,512], index: 10, kind: input, shape index: {}]   ;;  %s4872_s11 = inlined_call_operand.hbm [shape: bf16[128,128], index: 11, kind: input, shape index: {}]   ;;  %s4873_s12 = inlined_call_operand.vmem [shape: f32[1,128], index: 12, kind: input, shape index: {}]   ;;  %s4874_s13 = inlined_call_operand.hbm [shape: bf16[128,128], index: 13, kind: input, shape index: {}]   ;;  %s4875_s14 = inlined_call_operand.vmem [shape: f32[1,128], index: 14, kind: input, shape index: {}]   ;;  %s4876_s15 = inlined_call_operand.hbm [shape: f32[2,128], index: 15, kind: output, shape index: {}]  }
   0x1   :  { %21 = vsyncpa [#allocation6], 0 }
   0x2   :  { %22 = vsyncpa [#allocation9], 0 }
   0x3   :  { %23 = vsyncpa [#allocation12], 0 }
   0x4   :  { %24 = vsyncpa [#allocation15], 0 }
   0x5   :  { %25 = vsyncpa [#allocation4], 0  ;;  %s4322_s18 = smov [#allocation5]   ;;  %s4323_s20 = smov [#allocation8]  }
   0x6   :  { %s43_s19 = sshll.u32 %s4322_s18, 4  ;;  %s71_s21 = sshll.u32 %s4323_s20, 4  ;;  %s44_s19 = int_to_ptr.vmem [resolvable:$true] %s43_s19  ;;  %s4422_s21 = int_to_ptr.vmem [resolvable:$true] %s71_s21 }
   0x7   :  { %s4112_s24 = scalar_lea.hbm %s4862_s1, 256 }
   0x8   :  { %p4113_p0 = scmp.ne.s32.totalorder %s4862_s1, %s4112_s24  ;;  %p4116_p1 = scmp.lt.u32.totalorder %s4112_s24, %s4862_s1 }
   0xa   :  { %p4118_p2 = pnand %p4116_p1, %p4113_p0 }
   0xc   :  { %4121 = shalt.err (!%p4118_p2)
}
   0xd   :  { %s4122_s29 = scalar_lea.vmem %s44_s19, 256  ;;  %p4127_p4 = scmp.lt.s32.totalorder %s44_s19, %s44_s19 }
   0xe   :  { %p4123_p3 = scmp.ne.s32.totalorder %s44_s19, %s4122_s29  ;;  %p4128_p5 = scmp.lt.s32.totalorder %s4122_s29, %s4122_s29 }
  0x10   :  { %p4129_p6 = por %p4128_p5, %p4127_p4 }
  0x12   :  { %p4130_p7 = pnand %p4129_p6, %p4123_p3 }
  0x14   :  { %4133 = shalt.err (!%p4130_p7)
}
  0x15   :  { %s4877_s30 = smov 128   ;;  %s4878_s16 = smov 8  }
  0x16   :  { %49 = dma.hbm_to_vmem [thread:$0]  %s4862_s1, 256, %s44_s19, [#allocation6], %s4877_s30, %s4877_s30, %s4878_s16  }
  0x17   :  { %s4134_s23 = scalar_lea.hbm %s4866_s5, 8192 }
  0x18   :  { %p4135_p8 = scmp.ne.s32.totalorder %s4866_s5, %s4134_s23  ;;  %p4138_p9 = scmp.lt.u32.totalorder %s4134_s23, %s4866_s5 }
  0x1a   :  { %p4140_p10 = pnand %p4138_p9, %p4135_p8 }
  0x1c   :  { %4143 = shalt.err (!%p4140_p10)
}
  0x1d   :  { %s4144_s28 = scalar_lea.vmem %s4422_s21, 8192  ;;  %p4149_p12 = scmp.lt.s32.totalorder %s4422_s21, %s4422_s21 }
  0x1e   :  { %p4145_p11 = scmp.ne.s32.totalorder %s4422_s21, %s4144_s28  ;;  %p4150_p13 = scmp.lt.s32.totalorder %s4144_s28, %s4144_s28 }
  0x20   :  { %p4151_p0 = por %p4150_p13, %p4149_p12 }
  0x22   :  { %p4152_p1 = pnand %p4151_p0, %p4145_p11 }
  0x24   :  { %4155 = shalt.err (!%p4152_p1)
}
  0x25   :  { %s4326_s1 = smov 256   ;;  %s4327_s19 = smov 16  }
  0x26   :  { %77 = dma.hbm_to_vmem [thread:$0]  %s4866_s5, 8192, %s4422_s21, [#allocation9], %s4326_s1, %s4326_s1, %s4327_s19  }
  0x27   :  { %s4328_s18 = smov [#allocation11]   ;;  %s4329_s22 = smov [#allocation2]  }
  0x28   :  { %s99_s20 = sshll.u32 %s4328_s18, 4  ;;  %s31_s23 = sshll.u32 %s4329_s22, 4  ;;  %s100_s20 = int_to_ptr.vmem [resolvable:$true] %s99_s20  ;;  %s4456_s23 = int_to_ptr.vmem [resolvable:$true] %s31_s23 }
  0x29   :  { %s4156_s26 = scalar_lea.hbm %s4870_s9, 8192 }
  0x2a   :  { %p4157_p2 = scmp.ne.s32.totalorder %s4870_s9, %s4156_s26  ;;  %p4160_p3 = scmp.lt.u32.totalorder %s4156_s26, %s4870_s9 }
  0x2c   :  { %p4162_p4 = pnand %p4160_p3, %p4157_p2 }
  0x2e   :  { %4165 = shalt.err (!%p4162_p4)
}
  0x2f   :  { %s4166_s5 = scalar_lea.vmem %s100_s20, 8192  ;;  %p4171_p6 = scmp.lt.s32.totalorder %s100_s20, %s100_s20 }
  0x30   :  { %p4167_p5 = scmp.ne.s32.totalorder %s100_s20, %s4166_s5  ;;  %p4172_p7 = scmp.lt.s32.totalorder %s4166_s5, %s4166_s5 }
  0x32   :  { %p4173_p8 = por %p4172_p7, %p4171_p6 }
  0x34   :  { %p4174_p9 = pnand %p4173_p8, %p4167_p5 }
  0x36   :  { %4177 = shalt.err (!%p4174_p9)
}
  0x37   :  { %105 = dma.hbm_to_vmem [thread:$0]  %s4870_s9, 8192, %s100_s20, [#allocation12], %s4326_s1, %s4326_s1, %s4327_s19  }
  0x38   :  { %s4178_s22 = scalar_lea.hbm %s4861_s0, 256 }
  0x39   :  { %p4179_p10 = scmp.ne.s32.totalorder %s4861_s0, %s4178_s22  ;;  %p4182_p11 = scmp.lt.u32.totalorder %s4178_s22, %s4861_s0 }
  0x3b   :  { %p4184_p12 = pnand %p4182_p11, %p4179_p10 }
  0x3d   :  { %4187 = shalt.err (!%p4184_p12)
}
  0x3e   :  { %s4188_s26 = scalar_lea.vmem %s4456_s23, 256  ;;  %p4193_p0 = scmp.lt.s32.totalorder %s4456_s23, %s4456_s23 }
  0x3f   :  { %p4189_p13 = scmp.ne.s32.totalorder %s4456_s23, %s4188_s26  ;;  %p4194_p1 = scmp.lt.s32.totalorder %s4188_s26, %s4188_s26 }
  0x41   :  { %p4195_p2 = por %p4194_p1, %p4193_p0 }
  0x43   :  { %p4196_p3 = pnand %p4195_p2, %p4189_p13 }
  0x45   :  { %4199 = shalt.err (!%p4196_p3)
}
  0x46   :  { %s4879_s9 = smov 8   ;;  %s4880_s1 = smov 128  }
  0x47   :  { %37 = dma.hbm_to_vmem [thread:$0]  %s4861_s0, 256, %s4456_s23, [#allocation3], %s4880_s1, %s4880_s1, %s4879_s9  }
  0x48   :  { %s4330_s27 = smov [#allocation7]   ;;  %s4200_s29 = scalar_lea.hbm %s4864_s3, 8192 }
  0x49   :  { %s57_s28 = sshll.u32 %s4330_s27, 4  ;;  %p4201_p4 = scmp.ne.s32.totalorder %s4864_s3, %s4200_s29  ;;  %s58_s28 = int_to_ptr.vmem [resolvable:$true] %s57_s28 }
  0x4a   :  { %p4204_p5 = scmp.lt.u32.totalorder %s4200_s29, %s4864_s3 }
  0x4c   :  { %p4206_p6 = pnand %p4204_p5, %p4201_p4 }
  0x4e   :  { %4209 = shalt.err (!%p4206_p6)
}
  0x4f   :  { %s4210_s30 = scalar_lea.vmem %s58_s28, 8192  ;;  %p4215_p8 = scmp.lt.s32.totalorder %s58_s28, %s58_s28 }
  0x50   :  { %p4211_p7 = scmp.ne.s32.totalorder %s58_s28, %s4210_s30  ;;  %p4216_p9 = scmp.lt.s32.totalorder %s4210_s30, %s4210_s30 }
  0x52   :  { %p4217_p10 = por %p4216_p9, %p4215_p8 }
  0x54   :  { %p4218_p11 = pnand %p4217_p10, %p4211_p7 }
  0x56   :  { %4221 = shalt.err (!%p4218_p11)
}
  0x57   :  { %s4331_s0 = smov 512   ;;  %s4332_s23 = smov 32  }
  0x58   :  { %63 = dma.hbm_to_vmem [thread:$0]  %s4864_s3, 8192, %s58_s28, [#allocation6], %s4331_s0, %s4331_s0, %s4332_s23  }
  0x59   :  { %s4333_s26 = smov [#allocation10]   ;;  %s4334_s1 = smov [#allocation13]  }
  0x5a   :  { %s85_s9 = sshll.u32 %s4333_s26, 4  ;;  %s113_s19 = sshll.u32 %s4334_s1, 4  ;;  %s86_s9 = int_to_ptr.vmem [resolvable:$true] %s85_s9  ;;  %s114_s19 = int_to_ptr.vmem [resolvable:$true] %s113_s19 }
  0x5b   :  { %s4222_s5 = scalar_lea.hbm %s4868_s7, 8192 }
  0x5c   :  { %p4223_p12 = scmp.ne.s32.totalorder %s4868_s7, %s4222_s5  ;;  %p4226_p13 = scmp.lt.u32.totalorder %s4222_s5, %s4868_s7 }
  0x5e   :  { %p4228_p0 = pnand %p4226_p13, %p4223_p12 }
  0x60   :  { %4231 = shalt.err (!%p4228_p0)
}
  0x61   :  { %s4232_s3 = scalar_lea.vmem %s86_s9, 8192  ;;  %p4237_p2 = scmp.lt.s32.totalorder %s86_s9, %s86_s9 }
  0x62   :  { %p4233_p1 = scmp.ne.s32.totalorder %s86_s9, %s4232_s3  ;;  %p4238_p3 = scmp.lt.s32.totalorder %s4232_s3, %s4232_s3 }
  0x64   :  { %p4239_p4 = por %p4238_p3, %p4237_p2 }
  0x66   :  { %p4240_p5 = pnand %p4239_p4, %p4233_p1 }
  0x68   :  { %4243 = shalt.err (!%p4240_p5)
}
  0x69   :  { %91 = dma.hbm_to_vmem [thread:$0]  %s4868_s7, 8192, %s86_s9, [#allocation9], %s4331_s0, %s4331_s0, %s4332_s23  }
  0x6a   :  { %s4244_s16 = scalar_lea.hbm %s4872_s11, 1024 }
  0x6b   :  { %p4245_p6 = scmp.ne.s32.totalorder %s4872_s11, %s4244_s16  ;;  %p4248_p7 = scmp.lt.u32.totalorder %s4244_s16, %s4872_s11 }
  0x6d   :  { %p4250_p8 = pnand %p4248_p7, %p4245_p6 }
  0x6f   :  { %4253 = shalt.err (!%p4250_p8)
}
  0x70   :  { %s4254_s27 = scalar_lea.vmem %s114_s19, 1024  ;;  %p4259_p10 = scmp.lt.s32.totalorder %s114_s19, %s114_s19 }
  0x71   :  { %p4255_p9 = scmp.ne.s32.totalorder %s114_s19, %s4254_s27  ;;  %p4260_p11 = scmp.lt.s32.totalorder %s4254_s27, %s4254_s27 }
  0x73   :  { %p4261_p12 = por %p4260_p11, %p4259_p10 }
  0x75   :  { %p4262_p13 = pnand %p4261_p12, %p4255_p9 }
  0x77   :  { %4265 = shalt.err (!%p4262_p13)
}
  0x78   :  { %s4335_s7 = smov 64   ;;  %s4336_s0 = smov 4  }
  0x79   :  { %119 = dma.hbm_to_vmem [thread:$0]  %s4872_s11, 1024, %s114_s19, [#allocation12], %s4335_s7, %s4335_s7, %s4336_s0  }
  0x7a   :  { %s4337_s5 = smov [#allocation14]   ;;  %s4266_s18 = scalar_lea.hbm %s4874_s13, 1024 }
  0x7b   :  { %s127_s21 = sshll.u32 %s4337_s5, 4  ;;  %p4267_p0 = scmp.ne.s32.totalorder %s4874_s13, %s4266_s18  ;;  %s128_s21 = int_to_ptr.vmem [resolvable:$true] %s127_s21 }
  0x7c   :  { %p4270_p1 = scmp.lt.u32.totalorder %s4266_s18, %s4874_s13 }
  0x7e   :  { %p4272_p2 = pnand %p4270_p1, %p4267_p0 }
  0x80   :  { %4275 = shalt.err (!%p4272_p2)
}
  0x81   :  { %s4276_s30 = scalar_lea.vmem %s128_s21, 1024  ;;  %p4281_p4 = scmp.lt.s32.totalorder %s128_s21, %s128_s21 }
  0x82   :  { %p4277_p3 = scmp.ne.s32.totalorder %s128_s21, %s4276_s30  ;;  %p4282_p5 = scmp.lt.s32.totalorder %s4276_s30, %s4276_s30 }
  0x84   :  { %p4283_p6 = por %p4282_p5, %p4281_p4 }
  0x86   :  { %p4284_p7 = pnand %p4283_p6, %p4277_p3 }
  0x88   :  { %4287 = shalt.err (!%p4284_p7)
}
  0x89   :  { %133 = dma.hbm_to_vmem [thread:$0]  %s4874_s13, 1024, %s128_s21, [#allocation15], %s4335_s7, %s4335_s7, %s4336_s0  }
  0x8a   :  { %4310 = dma.done.wait [#allocation3], 256  }
  0x8b   :  { %4311 = vsyncadd [#allocation3], 4294967040 }
  0x8c   :  { %4312 = dma.done.wait [#allocation6], 8448  }
  0x8d   :  { %4313 = vsyncadd [#allocation6], 4294958848 }
  0x8e   :  { %4314 = dma.done.wait [#allocation9], 16384  }
  0x8f   :  { %4315 = vsyncadd [#allocation9], 4294950912 }
  0x90   :  { %4316 = dma.done.wait [#allocation12], 9216  }
  0x91   :  { %4317 = vsyncadd [#allocation12], 4294958080 }
  0x92   :  { %4318 = dma.done.wait [#allocation15], 1024  }
  0x93   :  { %4319 = vsyncadd [#allocation15], 4294966272  ;;  %v4338_v0 = vmov 0   ;;  %v168_v1 = vld [vmem:[#allocation7 + $0x8] sm:$0xff]  ;;  %v167_v3 = vld [vmem:[#allocation7] sm:$0xff]  ;;  %vm4340_vm0 = vmmov 0  }
  0x94   :  { %669 = vmatprep.mubr.bf16.mxu1 %v4338_v0  ;;  %626 = vmatprep.mubr.bf16.mxu0 %v4338_v0  ;;  %v172_v2 = vld [vmem:[#allocation7 + $0x28] sm:$0xff]  ;;  %v171_v6 = vld [vmem:[#allocation7 + $0x20] sm:$0xff]  ;;  %v170_v60 = vld [vmem:[#allocation7 + $0x18] sm:$0xff]  ;;  %vm862_vm2 = vcmask 130048   ;;  %s4341_s23 = smov [#allocation16]  }
  0x95   :  { %v3394_v4 = vcombine.high %v168_v1, %v172_v2  ;;  %v3393_v5 = vcombine.low %v168_v1, %v172_v2  ;;  %v176_v7 = vld [vmem:[#allocation7 + $0x48] sm:$0xff]  ;;  %v3392_v9 = vcombine.high %v167_v3, %v171_v6  ;;  %v3391_v11 = vcombine.low %v167_v3, %v171_v6  ;;  %v175_v12 = vld [vmem:[#allocation7 + $0x40] sm:$0xff]  ;;  %v174_v61 = vld [vmem:[#allocation7 + $0x38] sm:$0xff]  ;;  %s3378_s9 = sshll.u32 %s4341_s23, 4  ;;  %s3379_s9 = int_to_ptr.vmem [resolvable:$true] %s3378_s9 }
  0x96   :  { %v180_v8 = vld [vmem:[#allocation7 + $0x68] sm:$0xff]  ;;  %v179_v13 = vld [vmem:[#allocation7 + $0x60] sm:$0xff]  ;;  %v169_v1 = vld [vmem:[#allocation7 + $0x10] sm:$0xff]  ;;  %p4293_p9 = scmp.lt.s32.totalorder %s3379_s9, %s3379_s9 }
  0x97   :  { %v3402_v10 = vcombine.high %v176_v7, %v180_v8  ;;  %v184_v14 = vld [vmem:[#allocation7 + $0x88] sm:$0xff]  ;;  %637 = vmatprep.subr.bf16.mxu1 %v3394_v4  ;;  %v3400_v15 = vcombine.high %v175_v12, %v179_v13  ;;  %v183_v17 = vld [vmem:[#allocation7 + $0x80] sm:$0xff]  ;;  %594 = vmatprep.subr.bf16.mxu0 %v3392_v9  ;;  %v3401_v19 = vcombine.low %v176_v7, %v180_v8  ;;  %v173_v2 = vld [vmem:[#allocation7 + $0x30] sm:$0xff] }
  0x98   :  { %v188_v16 = vld [vmem:[#allocation7 + $0xa8] sm:$0xff]  ;;  %v187_v18 = vld [vmem:[#allocation7 + $0xa0] sm:$0xff]  ;;  %638 = vmatpush1.bf16.msra.mxu1 %v3393_v5  ;;  %595 = vmatpush1.bf16.msra.mxu0 %v3391_v11  ;;  %v3399_v21 = vcombine.low %v175_v12, %v179_v13  ;;  %v178_v7 = vld [vmem:[#allocation7 + $0x58] sm:$0xff]  ;;  %v3396_v13 = vcombine.high %v169_v1, %v173_v2 }
  0x99   :  { %639 = vmatprep.subr.bf16.mxu1 %v3402_v10  ;;  %v3410_v20 = vcombine.high %v184_v14, %v188_v16  ;;  %596 = vmatprep.subr.bf16.mxu0 %v3400_v15  ;;  %v3408_v22 = vcombine.high %v183_v17, %v187_v18  ;;  %v192_v23 = vld [vmem:[#allocation7 + $0xc8] sm:$0xff]  ;;  %v191_v25 = vld [vmem:[#allocation7 + $0xc0] sm:$0xff]  ;;  %v3409_v27 = vcombine.low %v184_v14, %v188_v16  ;;  %v182_v8 = vld [vmem:[#allocation7 + $0x78] sm:$0xff] }
  0x9a   :  { %v196_v24 = vld [vmem:[#allocation7 + $0xe8] sm:$0xff]  ;;  %v195_v26 = vld [vmem:[#allocation7 + $0xe0] sm:$0xff]  ;;  %v3407_v29 = vcombine.low %v183_v17, %v187_v18  ;;  %v3398_v10 = vcombine.high %v170_v60, %v174_v61  ;;  %v177_v11 = vld [vmem:[#allocation7 + $0x50] sm:$0xff]  ;;  %v3397_v15 = vcombine.low %v170_v60, %v174_v61  ;;  %v3395_v18 = vcombine.low %v169_v1, %v173_v2 }
  0x9b   :  { %v3418_v28 = vcombine.high %v192_v23, %v196_v24  ;;  %v3416_v30 = vcombine.high %v191_v25, %v195_v26  ;;  %v200_v31 = vld [vmem:[#allocation7 + $0x108] sm:$0xff]  ;;  %v199_v33 = vld [vmem:[#allocation7 + $0x100] sm:$0xff]  ;;  %v3417_v35 = vcombine.low %v192_v23, %v196_v24  ;;  %v3415_v37 = vcombine.low %v191_v25, %v195_v26  ;;  %v181_v12 = vld [vmem:[#allocation7 + $0x70] sm:$0xff] }
  0x9c   :  { %640 = vmatpush1.bf16.msra.mxu1 %v3401_v19  ;;  %597 = vmatpush1.bf16.msra.mxu0 %v3399_v21  ;;  %v204_v32 = vld [vmem:[#allocation7 + $0x128] sm:$0xff]  ;;  %v203_v34 = vld [vmem:[#allocation7 + $0x120] sm:$0xff]  ;;  %v186_v16 = vld [vmem:[#allocation7 + $0x98] sm:$0xff]  ;;  %v3406_v19 = vcombine.high %v178_v7, %v182_v8  ;;  %v3405_v23 = vcombine.low %v178_v7, %v182_v8  ;;  %v3403_v26 = vcombine.low %v177_v11, %v181_v12  ;;  %v234_v7 = vlaneseq }
  0x9d   :  { %641 = vmatprep.subr.bf16.mxu1 %v3410_v20  ;;  %598 = vmatprep.subr.bf16.mxu0 %v3408_v22  ;;  %v3426_v36 = vcombine.high %v200_v31, %v204_v32  ;;  %v3424_v38 = vcombine.high %v199_v33, %v203_v34  ;;  %v208_v39 = vld [vmem:[#allocation7 + $0x148] sm:$0xff]  ;;  %v207_v41 = vld [vmem:[#allocation7 + $0x140] sm:$0xff]  ;;  %v3425_v43 = vcombine.low %v200_v31, %v204_v32  ;;  %v190_v17 = vld [vmem:[#allocation7 + $0xb8] sm:$0xff] }
  0x9e   :  { %v212_v40 = vld [vmem:[#allocation7 + $0x168] sm:$0xff]  ;;  %v211_v42 = vld [vmem:[#allocation7 + $0x160] sm:$0xff]  ;;  %v3423_v45 = vcombine.low %v199_v33, %v203_v34  ;;  %v185_v20 = vld [vmem:[#allocation7 + $0x90] sm:$0xff]  ;;  %v3404_v22 = vcombine.high %v177_v11, %v181_v12  ;;  %v3413_v31 = vcombine.low %v186_v16, %v190_v17  ;;  %v4554_v8 = vshrl.u32 %v234_v7, 7 }
  0x9f   :  { %v3434_v44 = vcombine.high %v208_v39, %v212_v40  ;;  %v3432_v46 = vcombine.high %v207_v41, %v211_v42  ;;  %v216_v47 = vld [vmem:[#allocation7 + $0x188] sm:$0xff]  ;;  %v215_v49 = vld [vmem:[#allocation7 + $0x180] sm:$0xff]  ;;  %v3433_v51 = vcombine.low %v208_v39, %v212_v40  ;;  %v3431_v53 = vcombine.low %v207_v41, %v211_v42  ;;  %v189_v21 = vld [vmem:[#allocation7 + $0xb0] sm:$0xff] }
  0xa0   :  { %642 = vmatpush1.bf16.msra.mxu1 %v3409_v27  ;;  %599 = vmatpush1.bf16.msra.mxu0 %v3407_v29  ;;  %v220_v48 = vld [vmem:[#allocation7 + $0x1a8] sm:$0xff]  ;;  %v219_v50 = vld [vmem:[#allocation7 + $0x1a0] sm:$0xff]  ;;  %v194_v24 = vld [vmem:[#allocation7 + $0xd8] sm:$0xff]  ;;  %v3414_v27 = vcombine.high %v186_v16, %v190_v17  ;;  %v3411_v34 = vcombine.low %v185_v20, %v189_v21  ;;  %v4563_v11 = vsub.s32 1, %v4554_v8 }
  0xa1   :  { %643 = vmatprep.subr.bf16.mxu1 %v3418_v28  ;;  %600 = vmatprep.subr.bf16.mxu0 %v3416_v30  ;;  %v3442_v52 = vcombine.high %v216_v47, %v220_v48  ;;  %v224_v54 = vld [vmem:[#allocation7 + $0x1c8] sm:$0xff]  ;;  %v223_v56 = vld [vmem:[#allocation7 + $0x1c0] sm:$0xff]  ;;  %v3440_v57 = vcombine.high %v215_v49, %v219_v50  ;;  %v3441_v59 = vcombine.low %v216_v47, %v220_v48  ;;  %v198_v25 = vld [vmem:[#allocation7 + $0xf8] sm:$0xff] }
  0xa2   :  { %v228_v55 = vld [vmem:[#allocation7 + $0x1e8] sm:$0xff]  ;;  %v227_v58 = vld [vmem:[#allocation7 + $0x1e0] sm:$0xff]  ;;  %v3439_v63 = vcombine.low %v215_v49, %v219_v50  ;;  %v193_v28 = vld [vmem:[#allocation7 + $0xd0] sm:$0xff]  ;;  %v3412_v30 = vcombine.high %v185_v20, %v189_v21  ;;  %v3421_v39 = vcombine.low %v194_v24, %v198_v25 }
  0xa3   :  { %v3450_v62 = vcombine.high %v224_v54, %v228_v55  ;;  %v3448_v3 = vcombine.high %v223_v56, %v227_v58  ;;  %v165_v4 = vld [vmem:[#allocation2] sm:$0xff]  ;;  %v166_v5 = vld [vmem:[#allocation2 + $0x8] sm:$0xff]  ;;  %v3449_v6 = vcombine.low %v224_v54, %v228_v55  ;;  %v3447_v9 = vcombine.low %v223_v56, %v227_v58  ;;  %v197_v29 = vld [vmem:[#allocation7 + $0xf0] sm:$0xff] }
  0xa4   :  { %644 = vmatpush1.bf16.msra.mxu1 %v3417_v35  ;;  %601 = vmatpush1.bf16.msra.mxu0 %v3415_v37  ;;  %v4540_v14 = vpack.c.bf16 %v166_v5, %v165_v4  ;;  %v202_v32 = vld [vmem:[#allocation7 + $0x118] sm:$0xff]  ;;  %v3422_v35 = vcombine.high %v194_v24, %v198_v25  ;;  %v205_v37 = vld [vmem:[#allocation7 + $0x130] sm:$0xff]  ;;  %v3419_v42 = vcombine.low %v193_v28, %v197_v29  ;;  %v4568_v12 = vld [vmem:[%s4865_s4] sm:$0xff] }
  0xa5   :  { %645 = vmatprep.subr.bf16.mxu1 %v3426_v36  ;;  %602 = vmatprep.subr.bf16.mxu0 %v3424_v38  ;;  %v206_v33 = vld [vmem:[#allocation7 + $0x138] sm:$0xff]  ;;  %v201_v36 = vld [vmem:[#allocation7 + $0x110] sm:$0xff]  ;;  %v3420_v38 = vcombine.high %v193_v28, %v197_v29  ;;  %v241_v16 = vrot.slane %v4568_v12, %v4563_v11 }
  0xa6   :  { %v210_v40 = vld [vmem:[#allocation7 + $0x158] sm:$0xff]  ;;  %v3429_v47 = vcombine.low %v202_v32, %v206_v33  ;;  %v3427_v50 = vcombine.low %v201_v36, %v205_v37  ;;  %v225_v60 = vld [vmem:[#allocation7 + $0x1d0] sm:$0xff] }
  0xa7   :  { %v214_v41 = vld [vmem:[#allocation7 + $0x178] sm:$0xff]  ;;  %v229_v61 = vld [vmem:[#allocation7 + $0x1f0] sm:$0xff] }
  0xa8   :  { %646 = vmatpush1.bf16.msra.mxu1 %v3425_v43  ;;  %603 = vmatpush1.bf16.msra.mxu0 %v3423_v45  ;;  %v3430_v43 = vcombine.high %v202_v32, %v206_v33  ;;  %v213_v45 = vld [vmem:[#allocation7 + $0x170] sm:$0xff]  ;;  %v218_v48 = vld [vmem:[#allocation7 + $0x198] sm:$0xff]  ;;  %v3437_v55 = vcombine.low %v210_v40, %v214_v41  ;;  %v3451_v5 = vcombine.low %v225_v60, %v229_v61 }
  0xa9   :  { %647 = vmatprep.subr.bf16.mxu1 %v3434_v44  ;;  %604 = vmatprep.subr.bf16.mxu0 %v3432_v46  ;;  %v209_v44 = vld [vmem:[#allocation7 + $0x150] sm:$0xff]  ;;  %v3428_v46 = vcombine.high %v201_v36, %v205_v37  ;;  %v222_v49 = vld [vmem:[#allocation7 + $0x1b8] sm:$0xff] }
  0xaa   :  { %v3436_v54 = vcombine.high %v209_v44, %v213_v45  ;;  %v226_v56 = vld [vmem:[#allocation7 + $0x1d8] sm:$0xff]  ;;  %v3435_v58 = vcombine.low %v209_v44, %v213_v45 }
  0xac   :  { %648 = vmatpush1.bf16.msra.mxu1 %v3433_v51  ;;  %605 = vmatpush1.bf16.msra.mxu0 %v3431_v53  ;;  %v3438_v51 = vcombine.high %v210_v40, %v214_v41  ;;  %v221_v53 = vld [vmem:[#allocation7 + $0x1b0] sm:$0xff] }
  0xad   :  { %649 = vmatprep.subr.bf16.mxu1 %v3442_v52  ;;  %606 = vmatprep.subr.bf16.mxu0 %v3440_v57  ;;  %v217_v52 = vld [vmem:[#allocation7 + $0x190] sm:$0xff]  ;;  %v230_v57 = vld [vmem:[#allocation7 + $0x1f8] sm:$0xff] }
  0xae   :  { %v3443_v1 = vcombine.low %v217_v52, %v221_v53  ;;  %v3454_v2 = vcombine.high %v226_v56, %v230_v57  ;;  %v3453_v4 = vcombine.low %v226_v56, %v230_v57  ;;  %v4603_v56 = vld [vmem:[#allocation5] sm:$0xff]  ;;  %v4605_v57 = vld [vmem:[#allocation5 + $0x8] sm:$0xff] }
  0xaf   :  { %vm163_vm1 = vcmp.gt.f32.partialorder %v4603_v56, 0.0  ;;  %vm164_vm3 = vcmp.gt.f32.partialorder %v4605_v57, 0.0  ;;  %v4046_v57 = vld [vmem:[#allocation13] sm:$0xff]  }
  0xb0   :  { %650 = vmatpush1.bf16.msra.mxu1 %v3441_v59  ;;  %607 = vmatpush1.bf16.msra.mxu0 %v3439_v63  ;;  %v3446_v59 = vcombine.high %v218_v48, %v222_v49  ;;  %v3445_v63 = vcombine.low %v218_v48, %v222_v49 }
  0xb1   :  { %651 = vmatprep.subr.bf16.mxu1 %v3450_v62  ;;  %608 = vmatprep.subr.bf16.mxu0 %v3448_v3  ;;  %v3444_v62 = vcombine.high %v217_v52, %v221_v53  ;;  %v3452_v3 = vcombine.high %v225_v60, %v229_v61 }
  0xb4   :  { %652 = vmatpush1.bf16.msra.mxu1 %v3449_v6  ;;  %609 = vmatpush1.bf16.msra.mxu0 %v3447_v9  ;;  %v4339_v6 = vmov 0.0   ;;  %v4557_v9 = vsub.s32 0, %v4554_v8 }
  0xb5   :  { %723 = vmatprep.subr.bf16.mxu1 %v3398_v10  ;;  %680 = vmatprep.subr.bf16.mxu0 %v3396_v13  ;;  %v4560_v10 = vsub.s32 2, %v4554_v8  ;;  %v4571_v13 = vsub.s32 3, %v4554_v8 }
  0xb7   :  { %670 = vmatmul.mubr.bf16.vlgmr.msra.gmra.mrb[0].mxu1 %v4540_v14  ;;  %627 = vmatmul.mubr.bf16.vlgmr.msra.gmra.mrb[0].mxu0 %v4540_v14 }
  0xb8   :  { %724 = vmatpush1.bf16.msra.mxu1 %v3397_v15  ;;  %681 = vmatpush1.bf16.msra.mxu0 %v3395_v18  ;;  %v245_v15 = vrot.slane %v4568_v12, %v4560_v10  ;;  %v249_v18 = vrot.slane %v4568_v12, %v4571_v13 }
  0xb9   :  { %725 = vmatprep.subr.bf16.mxu1 %v3406_v19  ;;  %682 = vmatprep.subr.bf16.mxu0 %v3404_v22 }
  0xba   :  { %755 = vmatprep.mubr.bf16.mxu1 %v4338_v0  ;;  %712 = vmatprep.mubr.bf16.mxu0 %v4338_v0 }
  0xbc   :  { %726 = vmatpush1.bf16.msra.mxu1 %v3405_v23  ;;  %683 = vmatpush1.bf16.msra.mxu0 %v3403_v26 }
  0xbd   :  { %727 = vmatprep.subr.bf16.mxu1 %v3414_v27  ;;  %684 = vmatprep.subr.bf16.mxu0 %v3412_v30 }
  0xc0   :  { %728 = vmatpush1.bf16.msra.mxu1 %v3413_v31  ;;  %685 = vmatpush1.bf16.msra.mxu0 %v3411_v34 }
  0xc1   :  { %729 = vmatprep.subr.bf16.mxu1 %v3422_v35  ;;  %686 = vmatprep.subr.bf16.mxu0 %v3420_v38  ;;  %v252_v38 = vsub.s32 4, %v4554_v8 }
  0xc3   :  { %v253_v40 = vrot.slane %v4568_v12, %v252_v38 }
  0xc4   :  { %730 = vmatpush1.bf16.msra.mxu1 %v3421_v39  ;;  %687 = vmatpush1.bf16.msra.mxu0 %v3419_v42  ;;  %v256_v39 = vsub.s32 5, %v4554_v8 }
  0xc5   :  { %731 = vmatprep.subr.bf16.mxu1 %v3430_v43  ;;  %688 = vmatprep.subr.bf16.mxu0 %v3428_v46 }
  0xc6   :  { %v257_v41 = vrot.slane %v4568_v12, %v256_v39 }
  0xc8   :  { %732 = vmatpush1.bf16.msra.mxu1 %v3429_v47  ;;  %689 = vmatpush1.bf16.msra.mxu0 %v3427_v50 }
  0xc9   :  { %733 = vmatprep.subr.bf16.mxu1 %v3438_v51  ;;  %690 = vmatprep.subr.bf16.mxu0 %v3436_v54 }
  0xcc   :  { %734 = vmatpush1.bf16.msra.mxu1 %v3437_v55  ;;  %691 = vmatpush1.bf16.msra.mxu0 %v3435_v58 }
  0xcd   :  { %735 = vmatprep.subr.bf16.mxu1 %v3446_v59  ;;  %692 = vmatprep.subr.bf16.mxu0 %v3444_v62 }
  0xd0   :  { %736 = vmatpush1.bf16.msra.mxu1 %v3445_v63  ;;  %693 = vmatpush1.bf16.msra.mxu0 %v3443_v1 }
  0xd1   :  { %737 = vmatprep.subr.bf16.mxu1 %v3454_v2  ;;  %694 = vmatprep.subr.bf16.mxu0 %v3452_v3 }
  0xd4   :  { %738 = vmatpush1.bf16.msra.mxu1 %v3453_v4  ;;  %695 = vmatpush1.bf16.msra.mxu0 %v3451_v5 }
  0xd5   :  { %3716 = vmatprep.subr.bf16.mxu0 %v4339_v6  ;;  %3722 = vmatprep.subr.bf16.mxu1 %v4339_v6 }
  0xd7   :  { %756 = vmatmul.mubr.bf16.vlgmr.msra.gmra.mrb[4].mxu1 %v4540_v14  ;;  %713 = vmatmul.mubr.bf16.vlgmr.msra.gmra.mrb[4].mxu0 %v4540_v14  ;;  %v237_v14 = vrot.slane %v4568_v12, %v4557_v9 }
  0xd8   :  { %3718 = vmatprep.mubr.msk.bf16.mxu0 %vm4340_vm0, %v4339_v6  ;;  %3724 = vmatprep.mubr.msk.bf16.mxu1 %vm4340_vm0, %v4339_v6 }
 0x18a   :  { %v671_v17 = vpop.f32.mrb[0].mxu1  ;;  %v628_v20 = vpop.f32.mrb[0].mxu0 }
 0x18b   :  { %v673_v19 = vpop.f32.mrb[1].mxu1  ;;  %v629_v22 = vadd.f32 %v628_v20, %v237_v14  ;;  %v630_v23 = vpop.f32.mrb[1].mxu0  ;;  %v672_v24 = vadd.f32 %v671_v17, %v245_v15 }
 0x18c   :  { %v675_v21 = vpop.f32.mrb[2].mxu1  ;;  %v631_v27 = vadd.f32 %v630_v23, %v241_v16  ;;  %v632_v28 = vpop.f32.mrb[2].mxu0  ;;  %v674_v29 = vadd.f32 %v673_v19, %v249_v18 }
 0x18d   :  { %v676_v25 = vadd.f32 %v675_v21, %v245_v15  ;;  %v677_v26 = vpop.f32.mrb[3].mxu1  ;;  %v633_v31 = vadd.f32 %v632_v28, %v237_v14  ;;  %v634_v32 = vpop.f32.mrb[3].mxu0 }
 0x18e   :  { %v678_v30 = vadd.f32 %v677_v26, %v249_v18  ;;  %v635_v34 = vadd.f32 %v634_v32, %v241_v16 }
 0x18f   :  { %v768_v33 = vpack.c.bf16 %v676_v25, %v672_v24  ;;  %v766_v36 = vpack.c.bf16 %v633_v31, %v629_v22 }
 0x190   :  { %v769_v35 = vpack.c.bf16 %v678_v30, %v674_v29  ;;  %v767_v37 = vpack.c.bf16 %v635_v34, %v631_v27 }
 0x191   :  { %3717 = vmatpush3.bf16.xpose.msra.mxu0 %v768_v33 }
 0x192   :  { %3723 = vmatpush3.bf16.xpose.msra.mxu1 %v769_v35  ;;  %3728 = vmatprep.subr.bf16.mxu0 %v4339_v6 }
 0x193   :  { %3734 = vmatprep.subr.bf16.mxu1 %v4339_v6 }
 0x198   :  { %3719 = vmatmul.mubr.bf16.vlgmr.msra.gmra.mrb[8].mxu0 %v766_v36 }
 0x199   :  { %3725 = vmatmul.mubr.bf16.vlgmr.msra.gmra.mrb[8].mxu1 %v767_v37  ;;  %3730 = vmatprep.mubr.msk.bf16.mxu0 %vm4340_vm0, %v4339_v6 }
 0x19a   :  { %3736 = vmatprep.mubr.msk.bf16.mxu1 %vm4340_vm0, %v4339_v6 }
 0x1aa   :  { %v4595_v42 = vpop.f32.mrb[4].mxu1  ;;  %v714_v44 = vpop.f32.mrb[4].mxu0 }
 0x1ab   :  { %v4597_v43 = vpop.f32.mrb[5].mxu1  ;;  %v715_v46 = vadd.f32 %v714_v44, %v253_v40  ;;  %v716_v47 = vpop.f32.mrb[5].mxu0 }
 0x1ac   :  { %v4599_v45 = vpop.f32.mrb[6].mxu1  ;;  %v717_v49 = vadd.f32 %v716_v47, %v257_v41  ;;  %v718_v50 = vpop.f32.mrb[6].mxu0  ;;  %v3856_v47 = vld [vmem:[#allocation8 + $0x4] ss:$16 sps:$4 sm:$0xff]  }
 0x1ad   :  { %v4601_v48 = vpop.f32.mrb[7].mxu1  ;;  %v719_v51 = vadd.f32 %v718_v50, %v253_v40  ;;  %v720_v52 = vpop.f32.mrb[7].mxu0 }
 0x1ae   :  { %v721_v53 = vadd.f32 %v720_v52, %v257_v41 }
 0x1af   :  { %v770_v54 = vpack.c.bf16 %v719_v51, %v715_v46 }
 0x1b0   :  { %v771_v55 = vpack.c.bf16 %v721_v53, %v717_v49  ;;  %v3859_v49 = vld [vmem:[#allocation8 + $0xc] ss:$16 sps:$4 sm:$0xff]  }
 0x1b1   :  { %3729 = vmatpush3.bf16.msra.mxu0 %v770_v54 }
 0x1b2   :  { %3735 = vmatpush3.bf16.msra.mxu1 %v771_v55  ;;  %1425 = vmatprep.subr.bf16.mxu0 %v3856_v47  ;;  %v3899_v47 = vld [vmem:[#allocation8 + $0xe8] ss:$16 sps:$4 sm:$0xff]  }
 0x1b3   :  { %1468 = vmatprep.subr.bf16.mxu1 %v3859_v49  ;;  %v3907_v49 = vld [vmem:[#allocation8 + $0x10c] ss:$16 sps:$4 sm:$0xff]  }
 0x26b   :  { %v806_v58 = vpop.f32.mrb[8].mxu0 }
 0x26c   :  { %v858_v59 = vsel %vm163_vm1, %v806_v58, -1e+30  ;;  %v3720_v60 = vpop.f32.mrb[9].mxu0  ;;  %v847_v61 = vpop.f32.mrb[8].mxu1 }
 0x26d   :  { %v860_v62 = vsel %vm163_vm1, %v847_v61, -1e+30  ;;  %v809_v63 = vpop.f32.mrb[10].mxu0  ;;  %v3726_v1 = vpop.f32.mrb[9].mxu1  ;;  %v863_v2 = vsel %vm862_vm2, %v858_v59, -inf }
 0x26e   :  { %v859_v3 = vsel %vm164_vm3, %v809_v63, -1e+30  ;;  %v3721_v4 = vpop.f32.mrb[11].mxu0  ;;  %v850_v5 = vpop.f32.mrb[10].mxu1  ;;  %864 = vmax.xlane.f32.xlu1 %v863_v2  ;;  %v869_v7 = vsel %vm862_vm2, %v860_v62, -inf }
 0x26f   :  { %v861_v14 = vsel %vm164_vm3, %v850_v5, -1e+30  ;;  %v3727_v15 = vpop.f32.mrb[11].mxu1  ;;  %870 = vmax.xlane.f32.xlu0 %v869_v7  ;;  %v866_v16 = vsel %vm862_vm2, %v859_v3, -inf  ;;  %v3857_v2 = vld [vmem:[#allocation8 + $0x8] ss:$16 sps:$4 sm:$0xff]  }
 0x270   :  { %v872_v17 = vsel %vm862_vm2, %v861_v14, -inf  ;;  %v3865_v5 = vld [vmem:[#allocation8 + $0x2c] ss:$16 sps:$4 sm:$0xff]   ;;  %v3854_v15 = vld [vmem:[#allocation8] ss:$16 sps:$4 sm:$0xff]  }
 0x272   :  { %867 = vmax.xlane.f32.xlu1 %v866_v16 }
 0x273   :  { %873 = vmax.xlane.f32.xlu0 %v872_v17  ;;  %v3862_v17 = vld [vmem:[#allocation8 + $0x24] ss:$16 sps:$4 sm:$0xff]  }
 0x2fb   :  { %v865_v18 = vpop.xlane.xlu1 %864 }
 0x2fc   :  { %v875_v19 = vsub.f32 %v858_v59, %v865_v18  ;;  %v871_v20 = vpop.xlane.xlu0 %870  ;;  %v3863_v18 = vld [vmem:[#allocation8 + $0x28] ss:$16 sps:$4 sm:$0xff]  }
 0x2fd   :  { %v877_v21 = vsub.f32 %v860_v62, %v871_v20  ;;  %v3860_v20 = vld [vmem:[#allocation8 + $0x20] ss:$16 sps:$4 sm:$0xff]  }
 0x2fe   :  { %v879_v22 = vmul.f32 1.442695, %v875_v19  ;;  %v3871_v19 = vld [vmem:[#allocation8 + $0x4c] ss:$16 sps:$4 sm:$0xff]  }
 0x2ff   :  { %v883_v23 = vmul.f32 1.442695, %v877_v21  ;;  %v868_v24 = vpop.xlane.xlu1 %867  ;;  %v3868_v21 = vld [vmem:[#allocation8 + $0x44] ss:$16 sps:$4 sm:$0xff]  }
 0x300   :  { %4062 = vpow2.f32 %v879_v22  ;;  %v876_v25 = vsub.f32 %v859_v3, %v868_v24  ;;  %v874_v26 = vpop.xlane.xlu0 %873  ;;  %v3869_v22 = vld [vmem:[#allocation8 + $0x48] ss:$16 sps:$4 sm:$0xff]   ;;  %v3866_v24 = vld [vmem:[#allocation8 + $0x40] ss:$16 sps:$4 sm:$0xff]  }
 0x301   :  { %4064 = vpow2.f32 %v883_v23  ;;  %v878_v27 = vsub.f32 %v861_v14, %v874_v26  ;;  %v3877_v23 = vld [vmem:[#allocation8 + $0x6c] ss:$16 sps:$4 sm:$0xff]   ;;  %v3875_v26 = vld [vmem:[#allocation8 + $0x68] ss:$16 sps:$4 sm:$0xff]  }
 0x302   :  { %v881_v28 = vmul.f32 1.442695, %v876_v25  ;;  %v3874_v25 = vld [vmem:[#allocation8 + $0x64] ss:$16 sps:$4 sm:$0xff]  }
 0x303   :  { %v885_v29 = vmul.f32 1.442695, %v878_v27  ;;  %v3883_v27 = vld [vmem:[#allocation8 + $0x8c] ss:$16 sps:$4 sm:$0xff]  }
 0x304   :  { %4066 = vpow2.f32 %v881_v28  ;;  %v3872_v28 = vld [vmem:[#allocation8 + $0x60] ss:$16 sps:$4 sm:$0xff]  }
 0x305   :  { %4068 = vpow2.f32 %v885_v29  ;;  %v3880_v29 = vld [vmem:[#allocation8 + $0x84] ss:$16 sps:$4 sm:$0xff]  }
 0x30a   :  { %v4063_v30 = vpop.eup %4062 }
 0x30b   :  { %v4065_v31 = vpop.eup %4064  ;;  %v887_v35 = vsel %vm163_vm1, %v4063_v30, 0.0  ;;  %v3881_v30 = vld [vmem:[#allocation8 + $0x88] ss:$16 sps:$4 sm:$0xff]  }
 0x30c   :  { %v889_v32 = vsel %vm163_vm1, %v4065_v31, 0.0  ;;  %v891_v41 = vsel %vm862_vm2, %v887_v35, 0.0  ;;  %v3889_v31 = vld [vmem:[#allocation8 + $0xac] ss:$16 sps:$4 sm:$0xff]  }
 0x30d   :  { %v897_v33 = vsel %vm862_vm2, %v889_v32, 0.0 }
 0x30e   :  { %v4067_v34 = vpop.eup %4066  ;;  %898 = vadd.xlane.f32.xlu0 %v897_v33  ;;  %v3886_v33 = vld [vmem:[#allocation8 + $0xa4] ss:$16 sps:$4 sm:$0xff]  }
 0x30f   :  { %v4069_v36 = vpop.eup %4068  ;;  %v888_v44 = vsel %vm164_vm3, %v4067_v34, 0.0  ;;  %v3887_v34 = vld [vmem:[#allocation8 + $0xa8] ss:$16 sps:$4 sm:$0xff]  }
 0x310   :  { %v890_v37 = vsel %vm164_vm3, %v4069_v36, 0.0  ;;  %v894_v46 = vsel %vm862_vm2, %v888_v44, 0.0  ;;  %v3884_v36 = vld [vmem:[#allocation8 + $0xa0] ss:$16 sps:$4 sm:$0xff]  }
 0x311   :  { %v900_v40 = vsel %vm862_vm2, %v890_v37, 0.0 }
 0x312   :  { %901 = vadd.xlane.f32.xlu1 %v900_v40  ;;  %892 = vadd.xlane.f32.xlu0 %v891_v41  ;;  %v3893_v40 = vld [vmem:[#allocation8 + $0xc8] ss:$16 sps:$4 sm:$0xff]   ;;  %v3901_v41 = vld [vmem:[#allocation8 + $0xec] ss:$16 sps:$4 sm:$0xff]  }
 0x316   :  { %895 = vadd.xlane.f32.xlu1 %v894_v46  ;;  %v3898_v46 = vld [vmem:[#allocation8 + $0xe4] ss:$16 sps:$4 sm:$0xff]  }
 0x39b   :  { %v899_v50 = vpop.xlane.xlu0 %898 }
 0x39c   :  { %vm905_vm4 = vcmp.gt.f32.partialorder %v899_v50, 0.0 }
 0x39d   :  { %v909_v51 = vsel %vm905_vm4, %v899_v50, 1.0  ;;  %v3896_v50 = vld [vmem:[#allocation8 + $0xe0] ss:$16 sps:$4 sm:$0xff]  }
 0x39e   :  { %4070 = vrcp.f32 %v909_v51  ;;  %v3904_v51 = vld [vmem:[#allocation8 + $0x104] ss:$16 sps:$4 sm:$0xff]  }
 0x39f   :  { %v893_v52 = vpop.xlane.xlu0 %892  ;;  %v902_v53 = vpop.xlane.xlu1 %901 }
 0x3a0   :  { %vm903_vm5 = vcmp.gt.f32.partialorder %v893_v52, 0.0  ;;  %vm906_vm6 = vcmp.gt.f32.partialorder %v902_v53, 0.0 }
 0x3a1   :  { %v907_v54 = vsel %vm903_vm5, %v893_v52, 1.0  ;;  %v910_v55 = vsel %vm906_vm6, %v902_v53, 1.0  ;;  %v3905_v52 = vld [vmem:[#allocation8 + $0x108] ss:$16 sps:$4 sm:$0xff]   ;;  %v3913_v53 = vld [vmem:[#allocation8 + $0x12c] ss:$16 sps:$4 sm:$0xff]  }
 0x3a2   :  { %4072 = vrcp.f32 %v910_v55  ;;  %v3910_v55 = vld [vmem:[#allocation8 + $0x124] ss:$16 sps:$4 sm:$0xff]  }
 0x3a3   :  { %v896_v58 = vpop.xlane.xlu1 %895  ;;  %4074 = vrcp.f32 %v907_v54  ;;  %v3902_v54 = vld [vmem:[#allocation8 + $0x100] ss:$16 sps:$4 sm:$0xff]  }
 0x3a4   :  { %vm904_vm7 = vcmp.gt.f32.partialorder %v896_v58, 0.0 }
 0x3a5   :  { %v908_v59 = vsel %vm904_vm7, %v896_v58, 1.0  ;;  %v3911_v58 = vld [vmem:[#allocation8 + $0x128] ss:$16 sps:$4 sm:$0xff]  }
 0x3a6   :  { %4076 = vrcp.f32 %v908_v59  ;;  %v3919_v59 = vld [vmem:[#allocation8 + $0x14c] ss:$16 sps:$4 sm:$0xff]  }
 0x3a8   :  { %v4071_v60 = vpop.eup %4070 }
 0x3a9   :  { %v917_v63 = vmul.f32 %v4071_v60, %v889_v32  ;;  %v3878_v32 = vld [vmem:[#allocation8 + $0x80] ss:$16 sps:$4 sm:$0xff]  }
 0x3aa   :  { %v3908_v60 = vld [vmem:[#allocation8 + $0x120] ss:$16 sps:$4 sm:$0xff]  }
 0x3ac   :  { %v4073_v61 = vpop.eup %4072 }
 0x3ad   :  { %v4075_v62 = vpop.eup %4074  ;;  %v918_v1 = vmul.f32 %v4073_v61, %v890_v37  ;;  %v3892_v37 = vld [vmem:[#allocation8 + $0xc4] ss:$16 sps:$4 sm:$0xff]  }
 0x3ae   :  { %v915_v7 = vmul.f32 %v4075_v62, %v887_v35  ;;  %v3895_v35 = vld [vmem:[#allocation8 + $0xcc] ss:$16 sps:$4 sm:$0xff]   ;;  %v3916_v61 = vld [vmem:[#allocation8 + $0x144] ss:$16 sps:$4 sm:$0xff]   ;;  %v3917_v62 = vld [vmem:[#allocation8 + $0x148] ss:$16 sps:$4 sm:$0xff]  }
 0x3af   :  { %v920_v4 = vpack.c.bf16 %v918_v1, %v917_v63  ;;  %v3925_v63 = vld [vmem:[#allocation8 + $0x16c] ss:$16 sps:$4 sm:$0xff]   ;;  %v3914_v1 = vld [vmem:[#allocation8 + $0x140] ss:$16 sps:$4 sm:$0xff]  }
 0x3b0   :  { %v4077_v3 = vpop.eup %4076 }
 0x3b1   :  { %v916_v14 = vmul.f32 %v4077_v3, %v888_v44  ;;  %3737 = vmatmul.mubr.msk.bf16.vlgmr.msra.gmra.mrb[12].mxu1 %vm862_vm2, %v920_v4  ;;  %v3890_v44 = vld [vmem:[#allocation8 + $0xc0] ss:$16 sps:$4 sm:$0xff]   ;;  %v3923_v3 = vld [vmem:[#allocation8 + $0x168] ss:$16 sps:$4 sm:$0xff]   ;;  %v3931_v4 = vld [vmem:[#allocation8 + $0x18c] ss:$16 sps:$4 sm:$0xff]  }
 0x3b2   :  { %1469 = vmatpush1.bf16.msra.mxu1 %v3857_v2  ;;  %v3922_v2 = vld [vmem:[#allocation8 + $0x164] ss:$16 sps:$4 sm:$0xff]  }
 0x3b3   :  { %v919_v16 = vpack.c.bf16 %v916_v14, %v915_v7  ;;  %1470 = vmatprep.subr.bf16.mxu1 %v3865_v5  ;;  %v3920_v5 = vld [vmem:[#allocation8 + $0x160] ss:$16 sps:$4 sm:$0xff]   ;;  %v3928_v7 = vld [vmem:[#allocation8 + $0x184] ss:$16 sps:$4 sm:$0xff]   ;;  %v3929_v14 = vld [vmem:[#allocation8 + $0x188] ss:$16 sps:$4 sm:$0xff]  }
 0x3b5   :  { %3731 = vmatmul.mubr.msk.bf16.vlgmr.msra.gmra.mrb[12].mxu0 %vm862_vm2, %v919_v16  ;;  %v3934_v16 = vld [vmem:[#allocation8 + $0x1a4] ss:$16 sps:$4 sm:$0xff]  }
 0x3b6   :  { %1426 = vmatpush1.bf16.msra.mxu0 %v3854_v15  ;;  %1471 = vmatpush1.bf16.msra.mxu1 %v3863_v18  ;;  %v3926_v15 = vld [vmem:[#allocation8 + $0x180] ss:$16 sps:$4 sm:$0xff]  }
 0x3b7   :  { %1427 = vmatprep.subr.bf16.mxu0 %v3862_v17  ;;  %1472 = vmatprep.subr.bf16.mxu1 %v3871_v19  ;;  %v3937_v17 = vld [vmem:[#allocation8 + $0x1ac] ss:$16 sps:$4 sm:$0xff]   ;;  %v3932_v18 = vld [vmem:[#allocation8 + $0x1a0] ss:$16 sps:$4 sm:$0xff]   ;;  %v3935_v19 = vld [vmem:[#allocation8 + $0x1a8] ss:$16 sps:$4 sm:$0xff]  }
 0x3ba   :  { %1428 = vmatpush1.bf16.msra.mxu0 %v3860_v20  ;;  %1473 = vmatpush1.bf16.msra.mxu1 %v3869_v22  ;;  %v3940_v20 = vld [vmem:[#allocation8 + $0x1c4] ss:$16 sps:$4 sm:$0xff]   ;;  %v3938_v22 = vld [vmem:[#allocation8 + $0x1c0] ss:$16 sps:$4 sm:$0xff]  }
 0x3bb   :  { %1429 = vmatprep.subr.bf16.mxu0 %v3868_v21  ;;  %1474 = vmatprep.subr.bf16.mxu1 %v3877_v23  ;;  %v3943_v21 = vld [vmem:[#allocation8 + $0x1cc] ss:$16 sps:$4 sm:$0xff]   ;;  %v3941_v23 = vld [vmem:[#allocation8 + $0x1c8] ss:$16 sps:$4 sm:$0xff]  }
 0x3be   :  { %1430 = vmatpush1.bf16.msra.mxu0 %v3866_v24  ;;  %1475 = vmatpush1.bf16.msra.mxu1 %v3875_v26  ;;  %v3946_v24 = vld [vmem:[#allocation8 + $0x1e4] ss:$16 sps:$4 sm:$0xff]   ;;  %v3944_v26 = vld [vmem:[#allocation8 + $0x1e0] ss:$16 sps:$4 sm:$0xff]  }
 0x3bf   :  { %1431 = vmatprep.subr.bf16.mxu0 %v3874_v25  ;;  %1476 = vmatprep.subr.bf16.mxu1 %v3883_v27  ;;  %v3949_v25 = vld [vmem:[#allocation8 + $0x1ec] ss:$16 sps:$4 sm:$0xff]   ;;  %v3947_v27 = vld [vmem:[#allocation8 + $0x1e8] ss:$16 sps:$4 sm:$0xff]  }
 0x3c2   :  { %1432 = vmatpush1.bf16.msra.mxu0 %v3872_v28  ;;  %1477 = vmatpush1.bf16.msra.mxu1 %v3881_v30  ;;  %v264_v28 = vsub.s32 7, %v4554_v8 }
 0x3c3   :  { %1433 = vmatprep.subr.bf16.mxu0 %v3880_v29  ;;  %1478 = vmatprep.subr.bf16.mxu1 %v3889_v31  ;;  %v260_v29 = vsub.s32 6, %v4554_v8 }
 0x3c4   :  { %v265_v30 = vrot.slane %v4568_v12, %v264_v28 }
 0x3c5   :  { %v261_v31 = vrot.slane %v4568_v12, %v260_v29 }
 0x3c6   :  { %1434 = vmatpush1.bf16.msra.mxu0 %v3878_v32  ;;  %1479 = vmatpush1.bf16.msra.mxu1 %v3887_v34  ;;  %v760_v32 = vadd.f32 %v4597_v43, %v265_v30  ;;  %v764_v34 = vadd.f32 %v4601_v48, %v265_v30 }
 0x3c7   :  { %1435 = vmatprep.subr.bf16.mxu0 %v3886_v33  ;;  %1480 = vmatprep.subr.bf16.mxu1 %v3895_v35 }
 0x3ca   :  { %1436 = vmatpush1.bf16.msra.mxu0 %v3884_v36  ;;  %1481 = vmatpush1.bf16.msra.mxu1 %v3893_v40 }
 0x3cb   :  { %1437 = vmatprep.subr.bf16.mxu0 %v3892_v37  ;;  %1482 = vmatprep.subr.bf16.mxu1 %v3901_v41  ;;  %v758_v37 = vadd.f32 %v4595_v42, %v261_v31  ;;  %v4656_v42 = vld [vmem:[%s4867_s6] sm:$0xf] }
 0x3ce   :  { %1438 = vmatpush1.bf16.msra.mxu0 %v3890_v44  ;;  %1483 = vmatpush1.bf16.msra.mxu1 %v3899_v47  ;;  %v762_v47 = vadd.f32 %v4599_v45, %v261_v31  ;;  %v1088_v45 = vrot.slane %v4656_v42, %v4557_v9 }
 0x3cf   :  { %1439 = vmatprep.subr.bf16.mxu0 %v3898_v46  ;;  %1484 = vmatprep.subr.bf16.mxu1 %v3907_v49 }
 0x3d2   :  { %1440 = vmatpush1.bf16.msra.mxu0 %v3896_v50  ;;  %1485 = vmatpush1.bf16.msra.mxu1 %v3905_v52 }
 0x3d3   :  { %1441 = vmatprep.subr.bf16.mxu0 %v3904_v51  ;;  %1486 = vmatprep.subr.bf16.mxu1 %v3913_v53 }
 0x3d6   :  { %1442 = vmatpush1.bf16.msra.mxu0 %v3902_v54  ;;  %1487 = vmatpush1.bf16.msra.mxu1 %v3911_v58 }
 0x3d7   :  { %1443 = vmatprep.subr.bf16.mxu0 %v3910_v55  ;;  %1488 = vmatprep.subr.bf16.mxu1 %v3919_v59  ;;  %v1096_v59 = vrot.slane %v4656_v42, %v4560_v10 }
 0x3da   :  { %1444 = vmatpush1.bf16.msra.mxu0 %v3908_v60  ;;  %1489 = vmatpush1.bf16.msra.mxu1 %v3917_v62  ;;  %v1092_v62 = vrot.slane %v4656_v42, %v4563_v11 }
 0x3db   :  { %1445 = vmatprep.subr.bf16.mxu0 %v3916_v61  ;;  %1490 = vmatprep.subr.bf16.mxu1 %v3925_v63 }
 0x3de   :  { %1446 = vmatpush1.bf16.msra.mxu0 %v3914_v1  ;;  %1491 = vmatpush1.bf16.msra.mxu1 %v3923_v3 }
 0x3df   :  { %1447 = vmatprep.subr.bf16.mxu0 %v3922_v2  ;;  %1492 = vmatprep.subr.bf16.mxu1 %v3931_v4 }
 0x3e2   :  { %1448 = vmatpush1.bf16.msra.mxu0 %v3920_v5  ;;  %1493 = vmatpush1.bf16.msra.mxu1 %v3929_v14 }
 0x3e3   :  { %1449 = vmatprep.subr.bf16.mxu0 %v3928_v7  ;;  %1494 = vmatprep.subr.bf16.mxu1 %v3937_v17 }
 0x3e6   :  { %1450 = vmatpush1.bf16.msra.mxu0 %v3926_v15  ;;  %1495 = vmatpush1.bf16.msra.mxu1 %v3935_v19 }
 0x3e7   :  { %1451 = vmatprep.subr.bf16.mxu0 %v3934_v16  ;;  %1496 = vmatprep.subr.bf16.mxu1 %v3943_v21 }
 0x3ea   :  { %1452 = vmatpush1.bf16.msra.mxu0 %v3932_v18  ;;  %1497 = vmatpush1.bf16.msra.mxu1 %v3941_v23 }
 0x3eb   :  { %1453 = vmatprep.subr.bf16.mxu0 %v3940_v20  ;;  %1498 = vmatprep.subr.bf16.mxu1 %v3949_v25 }
 0x3ee   :  { %1454 = vmatpush1.bf16.msra.mxu0 %v3938_v22  ;;  %1499 = vmatpush1.bf16.msra.mxu1 %v3947_v27 }
 0x3ef   :  { %1455 = vmatprep.subr.bf16.mxu0 %v3946_v24  ;;  %3746 = vmatprep.subr.bf16.mxu1 %v4339_v6 }
 0x3f2   :  { %1456 = vmatpush1.bf16.msra.mxu0 %v3944_v26 }
 0x3f3   :  { %3740 = vmatprep.subr.bf16.mxu0 %v4339_v6 }
 0x484   :  { %v1002_v33 = vpop.f32.mrb[12].mxu1 }
 0x485   :  { %v1010_v35 = vadd.f32 %v1002_v33, %v760_v32  ;;  %v3738_v36 = vpop.f32.mrb[13].mxu1 }
 0x486   :  { %v1005_v40 = vpop.f32.mrb[14].mxu1 }
 0x487   :  { %v1012_v41 = vadd.f32 %v1005_v40, %v764_v34  ;;  %v3739_v44 = vpop.f32.mrb[15].mxu1  ;;  %v1014_v51 = vmax.f32 %v1010_v35, 0.0 }
 0x488   :  { %v958_v46 = vpop.f32.mrb[12].mxu0 }
 0x489   :  { %v1009_v49 = vadd.f32 %v958_v46, %v758_v37  ;;  %v3732_v50 = vpop.f32.mrb[13].mxu0  ;;  %v1016_v52 = vmax.f32 %v1012_v41, 0.0 }
 0x48a   :  { %v961_v12 = vpop.f32.mrb[14].mxu0  ;;  %v1636_v50 = vld [vmem:[#allocation10] sm:$0xff] }
 0x48b   :  { %v1011_v53 = vadd.f32 %v961_v12, %v762_v47  ;;  %v3733_v43 = vpop.f32.mrb[15].mxu0  ;;  %v1083_v54 = vpack.c.bf16 %v1016_v52, %v1014_v51  ;;  %v1013_v55 = vmax.f32 %v1009_v49, 0.0  ;;  %v1640_v51 = vld [vmem:[#allocation10 + $0x20] sm:$0xff]  ;;  %v1637_v52 = vld [vmem:[#allocation10 + $0x8] sm:$0xff] }
 0x48c   :  { %v3522_v12 = vcombine.low %v1636_v50, %v1640_v51  ;;  %v1641_v43 = vld [vmem:[#allocation10 + $0x28] sm:$0xff] }
 0x48d   :  { %v1015_v48 = vmax.f32 %v1011_v53, 0.0  ;;  %1457 = vmatprep.mubr.bf16.mxu0 %v1083_v54  ;;  %1500 = vmatprep.mubr.bf16.mxu1 %v1083_v54  ;;  %v3523_v53 = vcombine.high %v1636_v50, %v1640_v51  ;;  %v1644_v54 = vld [vmem:[#allocation10 + $0x40] sm:$0xff] }
 0x48e   :  { %v1676_v51 = vld [vmem:[#allocation10 + $0x140] sm:$0xff] }
 0x48f   :  { %v1082_v58 = vpack.c.bf16 %v1015_v48, %v1013_v55  ;;  %v1648_v55 = vld [vmem:[#allocation10 + $0x60] sm:$0xff]  ;;  %v3524_v48 = vcombine.low %v1637_v52, %v1641_v43 }
 0x491   :  { %1458 = vmatmul.mubr.bf16.vlgmr.msra.gmra.mrb[16].mxu0 %v1082_v58  ;;  %1501 = vmatmul.mubr.bf16.vlgmr.msra.gmra.mrb[16].mxu1 %v1082_v58  ;;  %v3525_v58 = vcombine.high %v1637_v52, %v1641_v43  ;;  %v1680_v52 = vld [vmem:[#allocation10 + $0x160] sm:$0xff]  ;;  %v1681_v43 = vld [vmem:[#allocation10 + $0x168] sm:$0xff] }
 0x492   :  { %3742 = vmatprep.mubr.msk.bf16.mxu0 %vm4340_vm0, %v4339_v6  ;;  %3748 = vmatprep.mubr.msk.bf16.mxu1 %vm4340_vm0, %v4339_v6 }
 0x564   :  { %v1459_v60 = vpop.f32.mrb[16].mxu0  ;;  %v1502_v61 = vpop.f32.mrb[16].mxu1 }
 0x565   :  { %v1461_v63 = vpop.f32.mrb[17].mxu0  ;;  %v4664_v1 = vpop.f32.mrb[17].mxu1  ;;  %v1460_v4 = vadd.f32 %v1459_v60, %v1088_v45  ;;  %v1503_v5 = vadd.f32 %v1502_v61, %v1096_v59  ;;  %v1652_v60 = vld [vmem:[#allocation10 + $0x80] sm:$0xff] }
 0x566   :  { %v1463_v2 = vpop.f32.mrb[18].mxu0  ;;  %v1506_v3 = vpop.f32.mrb[18].mxu1  ;;  %v1462_v17 = vadd.f32 %v1461_v63, %v1092_v62  ;;  %v1656_v61 = vld [vmem:[#allocation10 + $0xa0] sm:$0xff] }
 0x567   :  { %v1464_v7 = vadd.f32 %v1463_v2, %v1088_v45  ;;  %v1507_v14 = vadd.f32 %v1506_v3, %v1096_v59  ;;  %v1465_v15 = vpop.f32.mrb[19].mxu0  ;;  %v4666_v16 = vpop.f32.mrb[19].mxu1  ;;  %v3531_v45 = vcombine.high %v1644_v54, %v1648_v55  ;;  %v3530_v59 = vcombine.low %v1644_v54, %v1648_v55  ;;  %v1660_v2 = vld [vmem:[#allocation10 + $0xc0] sm:$0xff] }
 0x568   :  { %v1466_v18 = vadd.f32 %v1465_v15, %v1092_v62  ;;  %v3539_v62 = vcombine.high %v1652_v60, %v1656_v61  ;;  %v3538_v63 = vcombine.low %v1652_v60, %v1656_v61  ;;  %v1664_v3 = vld [vmem:[#allocation10 + $0xe0] sm:$0xff]  ;;  %v3562_v54 = vcombine.low %v1676_v51, %v1680_v52  ;;  %v1689_v61 = vld [vmem:[#allocation10 + $0x1a8] sm:$0xff] }
 0x569   :  { %v1511_v19 = vpack.c.bf16 %v1464_v7, %v1460_v4  ;;  %v1513_v20 = vpack.c.bf16 %v1507_v14, %v1503_v5  ;;  %v3547_v4 = vcombine.high %v1660_v2, %v1664_v3  ;;  %v3546_v5 = vcombine.low %v1660_v2, %v1664_v3  ;;  %v1668_v7 = vld [vmem:[#allocation10 + $0x100] sm:$0xff] }
 0x56a   :  { %v1512_v21 = vpack.c.bf16 %v1466_v18, %v1462_v17  ;;  %v1672_v14 = vld [vmem:[#allocation10 + $0x120] sm:$0xff] }
 0x56b   :  { %3747 = vmatpush3.bf16.msra.mxu1 %v1513_v20  ;;  %v3555_v15 = vcombine.high %v1668_v7, %v1672_v14  ;;  %v3554_v17 = vcombine.low %v1668_v7, %v1672_v14  ;;  %v1692_v3 = vld [vmem:[#allocation10 + $0x1c0] sm:$0xff]  ;;  %v1697_v14 = vld [vmem:[#allocation10 + $0x1e8] sm:$0xff] }
 0x56c   :  { %3741 = vmatpush3.bf16.xpose.msra.mxu0 %v1512_v21  ;;  %2106 = vmatprep.subr.bf16.mxu1 %v3525_v58  ;;  %v1684_v58 = vld [vmem:[#allocation10 + $0x180] sm:$0xff] }
 0x56d   :  { %2063 = vmatprep.subr.bf16.mxu0 %v3523_v53  ;;  %v3563_v53 = vcombine.high %v1676_v51, %v1680_v52  ;;  %v1650_v51 = vld [vmem:[#allocation10 + $0x70] sm:$0xff]  ;;  %v1647_v52 = vld [vmem:[#allocation10 + $0x58] sm:$0xff] }
 0x573   :  { %3743 = vmatmul.mubr.bf16.vlgmr.msra.gmra.mrb[20].mxu0 %v1511_v19 }
 0x574   :  { %2095 = vmatprep.mubr.bf16.mxu0 %v4338_v0  ;;  %2064 = vmatpush1.bf16.msra.mxu0 %v3522_v12  ;;  %v1677_v12 = vld [vmem:[#allocation10 + $0x148] sm:$0xff] }
 0x575   :  { %2065 = vmatprep.subr.bf16.mxu0 %v3531_v45  ;;  %v3564_v55 = vcombine.low %v1677_v12, %v1681_v43  ;;  %v1688_v45 = vld [vmem:[#allocation10 + $0x1a0] sm:$0xff] }
 0x576   :  { %v3571_v60 = vcombine.high %v1684_v58, %v1688_v45 }
 0x578   :  { %2066 = vmatpush1.bf16.msra.mxu0 %v3530_v59  ;;  %v1685_v59 = vld [vmem:[#allocation10 + $0x188] sm:$0xff] }
 0x579   :  { %2067 = vmatprep.subr.bf16.mxu0 %v3539_v62  ;;  %v3570_v62 = vcombine.low %v1684_v58, %v1688_v45  ;;  %v3573_v2 = vcombine.high %v1685_v59, %v1689_v61  ;;  %v1659_v58 = vld [vmem:[#allocation10 + $0xb8] sm:$0xff] }
 0x57c   :  { %2068 = vmatpush1.bf16.msra.mxu0 %v3538_v63  ;;  %v3572_v63 = vcombine.low %v1685_v59, %v1689_v61 }
 0x57d   :  { %2069 = vmatprep.subr.bf16.mxu0 %v3547_v4  ;;  %v1696_v4 = vld [vmem:[#allocation10 + $0x1e0] sm:$0xff] }
 0x57e   :  { %v3579_v7 = vcombine.high %v1692_v3, %v1696_v4 }
 0x580   :  { %2070 = vmatpush1.bf16.msra.mxu0 %v3546_v5  ;;  %v1693_v5 = vld [vmem:[#allocation10 + $0x1c8] sm:$0xff] }
 0x581   :  { %2071 = vmatprep.subr.bf16.mxu0 %v3555_v15  ;;  %v3578_v15 = vcombine.low %v1692_v3, %v1696_v4  ;;  %v1667_v3 = vld [vmem:[#allocation10 + $0xf8] sm:$0xff] }
 0x584   :  { %2072 = vmatpush1.bf16.msra.mxu0 %v3554_v17  ;;  %v3580_v17 = vcombine.low %v1693_v5, %v1697_v14 }
 0x585   :  { %2073 = vmatprep.subr.bf16.mxu0 %v3563_v53 }
 0x588   :  { %2074 = vmatpush1.bf16.msra.mxu0 %v3562_v54  ;;  %v1654_v54 = vld [vmem:[#allocation10 + $0x90] sm:$0xff] }
 0x589   :  { %2075 = vmatprep.subr.bf16.mxu0 %v3571_v60 }
 0x58c   :  { %2076 = vmatpush1.bf16.msra.mxu0 %v3570_v62  ;;  %v1662_v62 = vld [vmem:[#allocation10 + $0xd0] sm:$0xff] }
 0x58d   :  { %2077 = vmatprep.subr.bf16.mxu0 %v3579_v7 }
 0x590   :  { %2078 = vmatpush1.bf16.msra.mxu0 %v3578_v15  ;;  %v1670_v15 = vld [vmem:[#allocation10 + $0x110] sm:$0xff] }
 0x646   :  { %v1548_v22 = vpop.f32.mrb[20].mxu0 }
 0x647   :  { %v1555_v23 = vsel %vm163_vm1, %v1548_v22, -1e+30  ;;  %v3744_v24 = vpop.f32.mrb[21].mxu0 }
 0x648   :  { %v1551_v25 = vpop.f32.mrb[22].mxu0  ;;  %v1557_v26 = vsel %vm862_vm2, %v1555_v23, -inf  ;;  %v1645_v24 = vld [vmem:[#allocation10 + $0x48] sm:$0xff] }
 0x649   :  { %v1556_v27 = vsel %vm164_vm3, %v1551_v25, -1e+30  ;;  %1558 = vmax.xlane.f32.xlu0 %v1557_v26  ;;  %v3745_v30 = vpop.f32.mrb[23].mxu0  ;;  %v1649_v25 = vld [vmem:[#allocation10 + $0x68] sm:$0xff] }
 0x64a   :  { %v1560_v31 = vsel %vm862_vm2, %v1556_v27, -inf }
 0x64b   :  { %1561 = vmax.xlane.f32.xlu1 %v1560_v31  ;;  %v3533_v31 = vcombine.high %v1645_v24, %v1649_v25 }
 0x6d6   :  { %v1559_v32 = vpop.xlane.xlu0 %1558 }
 0x6d7   :  { %v1563_v33 = vsub.f32 %v1555_v23, %v1559_v32  ;;  %v1653_v32 = vld [vmem:[#allocation10 + $0x88] sm:$0xff] }
 0x6d8   :  { %v1562_v34 = vpop.xlane.xlu1 %1561 }
 0x6d9   :  { %v1565_v35 = vmul.f32 1.442695, %v1563_v33  ;;  %v1564_v36 = vsub.f32 %v1556_v27, %v1562_v34  ;;  %v1657_v33 = vld [vmem:[#allocation10 + $0xa8] sm:$0xff]  ;;  %v3532_v34 = vcombine.low %v1645_v24, %v1649_v25  ;;  %v1643_v24 = vld [vmem:[#allocation10 + $0x38] sm:$0xff] }
 0x6db   :  { %4078 = vpow2.f32 %v1565_v35  ;;  %v1567_v37 = vmul.f32 1.442695, %v1564_v36  ;;  %v3541_v35 = vcombine.high %v1653_v32, %v1657_v33  ;;  %v1661_v36 = vld [vmem:[#allocation10 + $0xc8] sm:$0xff] }
 0x6dd   :  { %4080 = vpow2.f32 %v1567_v37  ;;  %v1665_v37 = vld [vmem:[#allocation10 + $0xe8] sm:$0xff] }
 0x6e5   :  { %v4079_v40 = vpop.eup %4078 }
 0x6e6   :  { %v1569_v41 = vsel %vm163_vm1, %v4079_v40, 0.0  ;;  %v3540_v40 = vcombine.low %v1653_v32, %v1657_v33 }
 0x6e7   :  { %v4081_v44 = vpop.eup %4080  ;;  %v1571_v46 = vsel %vm862_vm2, %v1569_v41, 0.0 }
 0x6e8   :  { %1572 = vadd.xlane.f32.xlu0 %v1571_v46  ;;  %v1570_v47 = vsel %vm164_vm3, %v4081_v44, 0.0  ;;  %v3549_v44 = vcombine.high %v1661_v36, %v1665_v37  ;;  %v1673_v46 = vld [vmem:[#allocation10 + $0x128] sm:$0xff] }
 0x6e9   :  { %v1574_v49 = vsel %vm862_vm2, %v1570_v47, 0.0 }
 0x6ea   :  { %1575 = vadd.xlane.f32.xlu1 %v1574_v49 }
 0x775   :  { %v1573_v18 = vpop.xlane.xlu0 %1572 }
 0x776   :  { %vm1577_vm8 = vcmp.gt.f32.partialorder %v1573_v18, 0.0 }
 0x777   :  { %v1579_v19 = vsel %vm1577_vm8, %v1573_v18, 1.0  ;;  %v1576_v20 = vpop.xlane.xlu1 %1575  ;;  %v3581_v18 = vcombine.high %v1693_v5, %v1697_v14 }
 0x778   :  { %4082 = vrcp.f32 %v1579_v19  ;;  %vm1578_vm9 = vcmp.gt.f32.partialorder %v1576_v20, 0.0  ;;  %v1638_v19 = vld [vmem:[#allocation10 + $0x10] sm:$0xff] }
 0x779   :  { %v1580_v21 = vsel %vm1578_vm9, %v1576_v20, 1.0  ;;  %v1642_v20 = vld [vmem:[#allocation10 + $0x30] sm:$0xff] }
 0x77a   :  { %4084 = vrcp.f32 %v1580_v21  ;;  %v1639_v21 = vld [vmem:[#allocation10 + $0x18] sm:$0xff] }
 0x77b   :  { %v3528_v25 = vcombine.low %v1639_v21, %v1643_v24 }
 0x782   :  { %v4083_v22 = vpop.eup %4082 }
 0x783   :  { %v1583_v26 = vmul.f32 %v4083_v22, %v1569_v41  ;;  %v1669_v41 = vld [vmem:[#allocation10 + $0x108] sm:$0xff]  ;;  %v3526_v22 = vcombine.low %v1638_v19, %v1642_v20 }
 0x784   :  { %v4085_v23 = vpop.eup %4084  ;;  %v3557_v49 = vcombine.high %v1669_v41, %v1673_v46  ;;  %v3556_v50 = vcombine.low %v1669_v41, %v1673_v46 }
 0x785   :  { %v1584_v27 = vmul.f32 %v4085_v23, %v1570_v47  ;;  %v3548_v47 = vcombine.low %v1661_v36, %v1665_v37  ;;  %v3527_v23 = vcombine.high %v1638_v19, %v1642_v20  ;;  %v1675_v19 = vld [vmem:[#allocation10 + $0x138] sm:$0xff] }
 0x787   :  { %v1585_v30 = vpack.c.bf16 %v1584_v27, %v1583_v26  ;;  %v3529_v26 = vcombine.high %v1639_v21, %v1643_v24  ;;  %2149 = vmatprep.subr.bf16.mxu0 %v3527_v23  ;;  %v1100_v27 = vrot.slane %v4656_v42, %v4571_v13  ;;  %v1651_v42 = vld [vmem:[#allocation10 + $0x78] sm:$0xff]  ;;  %v1678_v23 = vld [vmem:[#allocation10 + $0x150] sm:$0xff] }
 0x788   :  { %v3536_v59 = vcombine.low %v1647_v52, %v1651_v42  ;;  %v1682_v24 = vld [vmem:[#allocation10 + $0x170] sm:$0xff] }
 0x789   :  { %3749 = vmatmul.mubr.msk.bf16.vlgmr.msra.gmra.mrb[20].mxu1 %vm862_vm2, %v1585_v30  ;;  %v1505_v30 = vadd.f32 %v4664_v1, %v1100_v27  ;;  %v1509_v32 = vadd.f32 %v4666_v16, %v1100_v27 }
 0x78a   :  { %2107 = vmatpush1.bf16.msra.mxu1 %v3524_v48  ;;  %2138 = vmatprep.mubr.bf16.mxu1 %v4338_v0  ;;  %v3565_v48 = vcombine.high %v1677_v12, %v1681_v43  ;;  %v3537_v43 = vcombine.high %v1647_v52, %v1651_v42 }
 0x78b   :  { %2108 = vmatprep.subr.bf16.mxu1 %v3533_v31 }
 0x78e   :  { %2109 = vmatpush1.bf16.msra.mxu1 %v3532_v34 }
 0x78f   :  { %2110 = vmatprep.subr.bf16.mxu1 %v3541_v35 }
 0x792   :  { %2111 = vmatpush1.bf16.msra.mxu1 %v3540_v40 }
 0x793   :  { %2112 = vmatprep.subr.bf16.mxu1 %v3549_v44  ;;  %v4110_v44 = vld [vmem:[#allocation2] sm:$0xff] }
 0x796   :  { %2113 = vmatpush1.bf16.msra.mxu1 %v3548_v47  ;;  %v4111_v47 = vld [vmem:[#allocation2 + $0x8] sm:$0xff] }
 0x797   :  { %2114 = vmatprep.subr.bf16.mxu1 %v3557_v49 }
 0x79a   :  { %2115 = vmatpush1.bf16.msra.mxu1 %v3556_v50  ;;  %v1646_v50 = vld [vmem:[#allocation10 + $0x50] sm:$0xff] }
 0x79b   :  { %2116 = vmatprep.subr.bf16.mxu1 %v3565_v48  ;;  %v3535_v53 = vcombine.high %v1646_v50, %v1650_v51  ;;  %v1655_v48 = vld [vmem:[#allocation10 + $0x98] sm:$0xff]  ;;  %v3534_v45 = vcombine.low %v1646_v50, %v1650_v51 }
 0x79c   :  { %v3545_v61 = vcombine.high %v1655_v48, %v1659_v58  ;;  %v3544_v5 = vcombine.low %v1655_v48, %v1659_v58  ;;  %v1699_v50 = vld [vmem:[#allocation10 + $0x1f8] sm:$0xff] }
 0x79e   :  { %2117 = vmatpush1.bf16.msra.mxu1 %v3564_v55  ;;  %v1658_v55 = vld [vmem:[#allocation10 + $0xb0] sm:$0xff] }
 0x79f   :  { %2118 = vmatprep.subr.bf16.mxu1 %v3573_v2  ;;  %v3543_v60 = vcombine.high %v1654_v54, %v1658_v55  ;;  %v1663_v2 = vld [vmem:[#allocation10 + $0xd8] sm:$0xff]  ;;  %v3542_v4 = vcombine.low %v1654_v54, %v1658_v55  ;;  %v4710_v55 = vld [vmem:[%s4869_s8] sm:$0xff] }
 0x7a0   :  { %v3553_v14 = vcombine.high %v1663_v2, %v1667_v3  ;;  %v3552_v21 = vcombine.low %v1663_v2, %v1667_v3  ;;  %v1706_v48 = vrot.slane %v4710_v55, %v4557_v9  ;;  %v1714_v58 = vrot.slane %v4710_v55, %v4560_v10 }
 0x7a2   :  { %2119 = vmatpush1.bf16.msra.mxu1 %v3572_v63  ;;  %v1666_v63 = vld [vmem:[#allocation10 + $0xf0] sm:$0xff] }
 0x7a3   :  { %2120 = vmatprep.subr.bf16.mxu1 %v3581_v18  ;;  %v3551_v7 = vcombine.high %v1662_v62, %v1666_v63  ;;  %v1671_v18 = vld [vmem:[#allocation10 + $0x118] sm:$0xff]  ;;  %v3550_v20 = vcombine.low %v1662_v62, %v1666_v63 }
 0x7a6   :  { %2121 = vmatpush1.bf16.msra.mxu1 %v3580_v17  ;;  %v1674_v17 = vld [vmem:[#allocation10 + $0x130] sm:$0xff] }
 0x7a7   :  { %2192 = vmatprep.subr.bf16.mxu1 %v3529_v26  ;;  %v1683_v26 = vld [vmem:[#allocation10 + $0x178] sm:$0xff]  ;;  %v3558_v27 = vcombine.low %v1670_v15, %v1674_v17 }
 0x85c   :  { %v1623_v31 = vpop.f32.mrb[20].mxu1 }
 0x85d   :  { %v1624_v33 = vadd.f32 %v1623_v31, %v1505_v30  ;;  %v3750_v34 = vpop.f32.mrb[21].mxu1  ;;  %v3560_v30 = vcombine.low %v1671_v18, %v1675_v19  ;;  %v3567_v31 = vcombine.high %v1678_v23, %v1682_v24 }
 0x85e   :  { %v1626_v35 = vpop.f32.mrb[22].mxu1  ;;  %v1690_v34 = vld [vmem:[#allocation10 + $0x1b0] sm:$0xff] }
 0x85f   :  { %v1630_v36 = vmax.f32 %v1624_v33, 0.0  ;;  %v1627_v37 = vadd.f32 %v1626_v35, %v1509_v32  ;;  %v3751_v40 = vpop.f32.mrb[23].mxu1  ;;  %v1686_v33 = vld [vmem:[#allocation10 + $0x190] sm:$0xff]  ;;  %v1687_v35 = vld [vmem:[#allocation10 + $0x198] sm:$0xff] }
 0x860   :  { %v3574_v51 = vcombine.low %v1686_v33, %v1690_v34 }
 0x861   :  { %v1632_v41 = vadd.f32 %v4110_v44, %v1630_v36  ;;  %v1631_v46 = vmax.f32 %v1627_v37, 0.0  ;;  %v1691_v36 = vld [vmem:[#allocation10 + $0x1b8] sm:$0xff]  ;;  %v3566_v37 = vcombine.low %v1678_v23, %v1682_v24  ;;  %v3575_v44 = vcombine.high %v1686_v33, %v1690_v34 }
 0x862   :  { %v3576_v52 = vcombine.low %v1687_v35, %v1691_v36  ;;  %v1722_v24 = vrot.slane %v4710_v55, %v252_v38 }
 0x863   :  { %v1633_v49 = vadd.f32 %v4111_v47, %v1631_v46  ;;  %v4687_v12 = vmul.f32 0.70710677, %v1632_v41  ;;  %v3577_v41 = vcombine.high %v1687_v35, %v1691_v36  ;;  %v1694_v46 = vld [vmem:[#allocation10 + $0x1d0] sm:$0xff] }
 0x864   :  { %v1698_v47 = vld [vmem:[#allocation10 + $0x1f0] sm:$0xff] }
 0x865   :  { %v4689_v1 = vmul.f32 0.70710677, %v1633_v49  ;;  %v1695_v49 = vld [vmem:[#allocation10 + $0x1d8] sm:$0xff]  ;;  %v3583_v42 = vcombine.high %v1694_v46, %v1698_v47 }
 0x866   :  { %v3584_v54 = vcombine.low %v1695_v49, %v1699_v50 }
 0x867   :  { %v4693_v16 = vpack.c.bf16 %v4689_v1, %v4687_v12 }
 0x869   :  { %2096 = vmatmul.mubr.bf16.vlgmr.msra.gmra.mrb[24].mxu0 %v4693_v16  ;;  %2139 = vmatmul.mubr.bf16.vlgmr.msra.gmra.mrb[24].mxu1 %v4693_v16 }
 0x86a   :  { %2150 = vmatpush1.bf16.msra.mxu0 %v3526_v22  ;;  %2193 = vmatpush1.bf16.msra.mxu1 %v3528_v25  ;;  %v3559_v22 = vcombine.high %v1670_v15, %v1674_v17  ;;  %v1679_v25 = vld [vmem:[#allocation10 + $0x158] sm:$0xff] }
 0x86b   :  { %2151 = vmatprep.subr.bf16.mxu0 %v3535_v53  ;;  %2194 = vmatprep.subr.bf16.mxu1 %v3537_v43  ;;  %v3569_v32 = vcombine.high %v1679_v25, %v1683_v26  ;;  %v3568_v40 = vcombine.low %v1679_v25, %v1683_v26  ;;  %v3585_v53 = vcombine.high %v1695_v49, %v1699_v50 }
 0x86c   :  { %2181 = vmatprep.mubr.bf16.mxu0 %v4338_v0  ;;  %2224 = vmatprep.mubr.bf16.mxu1 %v4338_v0  ;;  %v3561_v0 = vcombine.high %v1671_v18, %v1675_v19  ;;  %v3582_v43 = vcombine.low %v1694_v46, %v1698_v47 }
 0x86e   :  { %2152 = vmatpush1.bf16.msra.mxu0 %v3534_v45  ;;  %2195 = vmatpush1.bf16.msra.mxu1 %v3536_v59 }
 0x86f   :  { %2153 = vmatprep.subr.bf16.mxu0 %v3543_v60  ;;  %2196 = vmatprep.subr.bf16.mxu1 %v3545_v61  ;;  %v1718_v60 = vrot.slane %v4710_v55, %v4571_v13 }
 0x872   :  { %2154 = vmatpush1.bf16.msra.mxu0 %v3542_v4  ;;  %2197 = vmatpush1.bf16.msra.mxu1 %v3544_v5 }
 0x873   :  { %2155 = vmatprep.subr.bf16.mxu0 %v3551_v7  ;;  %2198 = vmatprep.subr.bf16.mxu1 %v3553_v14 }
 0x876   :  { %2156 = vmatpush1.bf16.msra.mxu0 %v3550_v20  ;;  %2199 = vmatpush1.bf16.msra.mxu1 %v3552_v21 }
 0x877   :  { %2157 = vmatprep.subr.bf16.mxu0 %v3559_v22  ;;  %2200 = vmatprep.subr.bf16.mxu1 %v3561_v0 }
 0x87a   :  { %2158 = vmatpush1.bf16.msra.mxu0 %v3558_v27  ;;  %2201 = vmatpush1.bf16.msra.mxu1 %v3560_v30  ;;  %v1726_v27 = vrot.slane %v4710_v55, %v256_v39 }
 0x87b   :  { %2159 = vmatprep.subr.bf16.mxu0 %v3567_v31  ;;  %2202 = vmatprep.subr.bf16.mxu1 %v3569_v32 }
 0x87e   :  { %2160 = vmatpush1.bf16.msra.mxu0 %v3566_v37  ;;  %2203 = vmatpush1.bf16.msra.mxu1 %v3568_v40 }
 0x87f   :  { %2161 = vmatprep.subr.bf16.mxu0 %v3575_v44  ;;  %2204 = vmatprep.subr.bf16.mxu1 %v3577_v41 }
 0x882   :  { %2162 = vmatpush1.bf16.msra.mxu0 %v3574_v51  ;;  %2205 = vmatpush1.bf16.msra.mxu1 %v3576_v52 }
 0x883   :  { %2163 = vmatprep.subr.bf16.mxu0 %v3583_v42  ;;  %2206 = vmatprep.subr.bf16.mxu1 %v3585_v53 }
 0x886   :  { %2164 = vmatpush1.bf16.msra.mxu0 %v3582_v43  ;;  %2207 = vmatpush1.bf16.msra.mxu1 %v3584_v54 }
 0x887   :  { %3752 = vmatprep.subr.bf16.mxu0 %v4339_v6  ;;  %3758 = vmatprep.subr.bf16.mxu1 %v4339_v6 }
 0x889   :  { %2182 = vmatmul.mubr.bf16.vlgmr.msra.gmra.mrb[28].mxu0 %v4693_v16  ;;  %2225 = vmatmul.mubr.bf16.vlgmr.msra.gmra.mrb[28].mxu1 %v4693_v16  ;;  %v1710_v16 = vrot.slane %v4710_v55, %v4563_v11 }
 0x88a   :  { %3754 = vmatprep.mubr.msk.bf16.mxu0 %vm4340_vm0, %v4339_v6  ;;  %3760 = vmatprep.mubr.msk.bf16.mxu1 %vm4340_vm0, %v4339_v6 }
 0x93c   :  { %v2097_v45 = vpop.f32.mrb[24].mxu0  ;;  %v2140_v59 = vpop.f32.mrb[24].mxu1 }
 0x93d   :  { %v2099_v61 = vpop.f32.mrb[25].mxu0  ;;  %v2142_v62 = vpop.f32.mrb[25].mxu1  ;;  %v2098_v3 = vadd.f32 %v2097_v45, %v1706_v48  ;;  %v2141_v4 = vadd.f32 %v2140_v59, %v1714_v58 }
 0x93e   :  { %v2101_v63 = vpop.f32.mrb[26].mxu0  ;;  %v2144_v2 = vpop.f32.mrb[26].mxu1  ;;  %v2100_v17 = vadd.f32 %v2099_v61, %v1710_v16  ;;  %v2143_v18 = vadd.f32 %v2142_v62, %v1718_v60 }
 0x93f   :  { %v2102_v5 = vadd.f32 %v2101_v63, %v1706_v48  ;;  %v2145_v7 = vadd.f32 %v2144_v2, %v1714_v58  ;;  %v2103_v14 = vpop.f32.mrb[27].mxu0  ;;  %v2146_v15 = vpop.f32.mrb[27].mxu1 }
 0x940   :  { %v2104_v19 = vadd.f32 %v2103_v14, %v1710_v16  ;;  %v2147_v20 = vadd.f32 %v2146_v15, %v1718_v60 }
 0x941   :  { %v2235_v21 = vpack.c.bf16 %v2102_v5, %v2098_v3  ;;  %v2237_v22 = vpack.c.bf16 %v2145_v7, %v2141_v4 }
 0x942   :  { %v2236_v0 = vpack.c.bf16 %v2104_v19, %v2100_v17  ;;  %v2238_v23 = vpack.c.bf16 %v2147_v20, %v2143_v18 }
 0x943   :  { %3753 = vmatpush3.bf16.xpose.msra.mxu0 %v2237_v22 }
 0x944   :  { %3759 = vmatpush3.bf16.xpose.msra.mxu1 %v2238_v23  ;;  %3764 = vmatprep.subr.bf16.mxu0 %v4339_v6 }
 0x945   :  { %3770 = vmatprep.subr.bf16.mxu1 %v4339_v6 }
 0x94a   :  { %3755 = vmatmul.mubr.bf16.vlgmr.msra.gmra.mrb[32].mxu0 %v2235_v21 }
 0x94b   :  { %3761 = vmatmul.mubr.bf16.vlgmr.msra.gmra.mrb[32].mxu1 %v2236_v0  ;;  %3766 = vmatprep.mubr.msk.bf16.mxu0 %vm4340_vm0, %v4339_v6 }
 0x94c   :  { %3772 = vmatprep.mubr.msk.bf16.mxu1 %vm4340_vm0, %v4339_v6 }
 0x95c   :  { %v2183_v25 = vpop.f32.mrb[28].mxu0  ;;  %v4729_v26 = vpop.f32.mrb[28].mxu1 }
 0x95d   :  { %v2185_v30 = vpop.f32.mrb[29].mxu0  ;;  %v4734_v31 = vpop.f32.mrb[29].mxu1  ;;  %v2184_v34 = vadd.f32 %v2183_v25, %v1722_v24 }
 0x95e   :  { %v2187_v32 = vpop.f32.mrb[30].mxu0  ;;  %v4736_v33 = vpop.f32.mrb[30].mxu1  ;;  %v2186_v40 = vadd.f32 %v2185_v30, %v1726_v27 }
 0x95f   :  { %v2188_v35 = vadd.f32 %v2187_v32, %v1722_v24  ;;  %v2189_v36 = vpop.f32.mrb[31].mxu0  ;;  %v4738_v37 = vpop.f32.mrb[31].mxu1 }
 0x960   :  { %v2190_v38 = vadd.f32 %v2189_v36, %v1726_v27 }
 0x961   :  { %v2239_v44 = vpack.c.bf16 %v2188_v35, %v2184_v34  ;;  %v3952_v34 = vld [vmem:[#allocation11 + $0x4] ss:$16 sps:$4 sm:$0xff]   ;;  %v3955_v35 = vld [vmem:[#allocation11 + $0xc] ss:$16 sps:$4 sm:$0xff]  }
 0x962   :  { %v2240_v41 = vpack.c.bf16 %v2190_v38, %v2186_v40 }
 0x963   :  { %3765 = vmatpush3.bf16.msra.mxu0 %v2239_v44 }
 0x964   :  { %3771 = vmatpush3.bf16.msra.mxu1 %v2240_v41  ;;  %2889 = vmatprep.subr.bf16.mxu0 %v3952_v34  ;;  %v3995_v34 = vld [vmem:[#allocation11 + $0xe8] ss:$16 sps:$4 sm:$0xff]  }
 0x965   :  { %2932 = vmatprep.subr.bf16.mxu1 %v3955_v35  ;;  %v3994_v35 = vld [vmem:[#allocation11 + $0xe4] ss:$16 sps:$4 sm:$0xff]  }
 0xa1d   :  { %v2275_v46 = vpop.f32.mrb[32].mxu0 }
 0xa1e   :  { %v3756_v47 = vpop.f32.mrb[33].mxu0  ;;  %v2316_v39 = vpop.f32.mrb[32].mxu1  ;;  %v2323_v43 = vsel %vm163_vm1, %v2275_v46, -1e+30 }
 0xa1f   :  { %v2325_v49 = vsel %vm163_vm1, %v2316_v39, -1e+30  ;;  %v2278_v50 = vpop.f32.mrb[34].mxu0  ;;  %v3762_v51 = vpop.f32.mrb[33].mxu1  ;;  %v2327_v59 = vsel %vm862_vm2, %v2323_v43, -inf }
 0xa20   :  { %v3757_v52 = vpop.f32.mrb[35].mxu0  ;;  %v2319_v42 = vpop.f32.mrb[34].mxu1  ;;  %v2333_v53 = vsel %vm862_vm2, %v2325_v49, -inf  ;;  %v2324_v45 = vsel %vm164_vm3, %v2278_v50, -1e+30 }
 0xa21   :  { %v2326_v54 = vsel %vm164_vm3, %v2319_v42, -1e+30  ;;  %2334 = vmax.xlane.f32.xlu0 %v2333_v53  ;;  %v3763_v48 = vpop.f32.mrb[35].mxu1  ;;  %v2330_v16 = vsel %vm862_vm2, %v2324_v45, -inf  ;;  %v3953_v53 = vld [vmem:[#allocation11 + $0x8] ss:$16 sps:$4 sm:$0xff]  }
 0xa22   :  { %v2336_v58 = vsel %vm862_vm2, %v2326_v54, -inf }
 0xa23   :  { %2337 = vmax.xlane.f32.xlu1 %v2336_v58 }
 0xa25   :  { %2328 = vmax.xlane.f32.xlu0 %v2327_v59  ;;  %v3950_v59 = vld [vmem:[#allocation11] ss:$16 sps:$4 sm:$0xff]  }
 0xa27   :  { %2331 = vmax.xlane.f32.xlu1 %v2330_v16  ;;  %v3959_v16 = vld [vmem:[#allocation11 + $0x28] ss:$16 sps:$4 sm:$0xff]  }
 0xaae   :  { %v2335_v60 = vpop.xlane.xlu0 %2334 }
 0xaaf   :  { %v2341_v61 = vsub.f32 %v2325_v49, %v2335_v60 }
 0xab0   :  { %v2338_v62 = vpop.xlane.xlu1 %2337 }
 0xab1   :  { %v2347_v63 = vmul.f32 1.442695, %v2341_v61  ;;  %v2342_v2 = vsub.f32 %v2326_v54, %v2338_v62  ;;  %v3961_v54 = vld [vmem:[#allocation11 + $0x2c] ss:$16 sps:$4 sm:$0xff]   ;;  %v3958_v61 = vld [vmem:[#allocation11 + $0x24] ss:$16 sps:$4 sm:$0xff]  }
 0xab2   :  { %v2329_v3 = vpop.xlane.xlu0 %2328  ;;  %v3967_v62 = vld [vmem:[#allocation11 + $0x4c] ss:$16 sps:$4 sm:$0xff]  }
 0xab3   :  { %4086 = vpow2.f32 %v2347_v63  ;;  %v2349_v4 = vmul.f32 1.442695, %v2342_v2  ;;  %v2339_v5 = vsub.f32 %v2323_v43, %v2329_v3  ;;  %v3956_v63 = vld [vmem:[#allocation11 + $0x20] ss:$16 sps:$4 sm:$0xff]   ;;  %v3965_v2 = vld [vmem:[#allocation11 + $0x48] ss:$16 sps:$4 sm:$0xff]  }
 0xab4   :  { %v2332_v7 = vpop.xlane.xlu1 %2331  ;;  %v3964_v3 = vld [vmem:[#allocation11 + $0x44] ss:$16 sps:$4 sm:$0xff]  }
 0xab5   :  { %4088 = vpow2.f32 %v2349_v4  ;;  %v2343_v14 = vmul.f32 1.442695, %v2339_v5  ;;  %v2340_v15 = vsub.f32 %v2324_v45, %v2332_v7  ;;  %v3973_v4 = vld [vmem:[#allocation11 + $0x6c] ss:$16 sps:$4 sm:$0xff]   ;;  %v3962_v5 = vld [vmem:[#allocation11 + $0x40] ss:$16 sps:$4 sm:$0xff]  }
 0xab6   :  { %v3971_v7 = vld [vmem:[#allocation11 + $0x68] ss:$16 sps:$4 sm:$0xff]  }
 0xab7   :  { %4090 = vpow2.f32 %v2343_v14  ;;  %v2345_v17 = vmul.f32 1.442695, %v2340_v15  ;;  %v3970_v14 = vld [vmem:[#allocation11 + $0x64] ss:$16 sps:$4 sm:$0xff]   ;;  %v3979_v15 = vld [vmem:[#allocation11 + $0x8c] ss:$16 sps:$4 sm:$0xff]  }
 0xab9   :  { %4092 = vpow2.f32 %v2345_v17  ;;  %v3968_v17 = vld [vmem:[#allocation11 + $0x60] ss:$16 sps:$4 sm:$0xff]  }
 0xabd   :  { %v4087_v18 = vpop.eup %4086 }
 0xabe   :  { %v2353_v19 = vsel %vm163_vm1, %v4087_v18, 0.0  ;;  %v3977_v18 = vld [vmem:[#allocation11 + $0x88] ss:$16 sps:$4 sm:$0xff]  }
 0xabf   :  { %v4089_v20 = vpop.eup %4088  ;;  %v2361_v21 = vsel %vm862_vm2, %v2353_v19, 0.0 }
 0xac0   :  { %2362 = vadd.xlane.f32.xlu0 %v2361_v21  ;;  %v2354_v22 = vsel %vm164_vm3, %v4089_v20, 0.0  ;;  %v3985_v20 = vld [vmem:[#allocation11 + $0xac] ss:$16 sps:$4 sm:$0xff]   ;;  %v3974_v21 = vld [vmem:[#allocation11 + $0x80] ss:$16 sps:$4 sm:$0xff]  }
 0xac1   :  { %v4091_v0 = vpop.eup %4090  ;;  %v2364_v23 = vsel %vm862_vm2, %v2354_v22, 0.0 }
 0xac2   :  { %2365 = vadd.xlane.f32.xlu1 %v2364_v23  ;;  %v2351_v24 = vsel %vm163_vm1, %v4091_v0, 0.0  ;;  %v3982_v0 = vld [vmem:[#allocation11 + $0xa4] ss:$16 sps:$4 sm:$0xff]   ;;  %v3991_v23 = vld [vmem:[#allocation11 + $0xcc] ss:$16 sps:$4 sm:$0xff]  }
 0xac3   :  { %v4093_v25 = vpop.eup %4092  ;;  %v2355_v27 = vsel %vm862_vm2, %v2351_v24, 0.0 }
 0xac4   :  { %2356 = vadd.xlane.f32.xlu0 %v2355_v27  ;;  %v2352_v30 = vsel %vm164_vm3, %v4093_v25, 0.0  ;;  %v3989_v25 = vld [vmem:[#allocation11 + $0xc8] ss:$16 sps:$4 sm:$0xff]   ;;  %v3988_v27 = vld [vmem:[#allocation11 + $0xc4] ss:$16 sps:$4 sm:$0xff]  }
 0xac5   :  { %v2358_v32 = vsel %vm862_vm2, %v2352_v30, 0.0 }
 0xac6   :  { %2359 = vadd.xlane.f32.xlu1 %v2358_v32  ;;  %v3986_v32 = vld [vmem:[#allocation11 + $0xc0] ss:$16 sps:$4 sm:$0xff]  }
 0xb4d   :  { %v2363_v36 = vpop.xlane.xlu0 %2362 }
 0xb4e   :  { %vm2369_vm10 = vcmp.gt.f32.partialorder %v2363_v36, 0.0 }
 0xb4f   :  { %v2373_v40 = vsel %vm2369_vm10, %v2363_v36, 1.0  ;;  %v2366_v38 = vpop.xlane.xlu1 %2365  ;;  %v4003_v36 = vld [vmem:[#allocation11 + $0x10c] ss:$16 sps:$4 sm:$0xff]  }
 0xb50   :  { %4094 = vrcp.f32 %v2373_v40  ;;  %vm2370_vm11 = vcmp.gt.f32.partialorder %v2366_v38, 0.0  ;;  %v3992_v40 = vld [vmem:[#allocation11 + $0xe0] ss:$16 sps:$4 sm:$0xff]  }
 0xb51   :  { %v2374_v44 = vsel %vm2370_vm11, %v2366_v38, 1.0  ;;  %v2357_v41 = vpop.xlane.xlu0 %2356  ;;  %v4001_v38 = vld [vmem:[#allocation11 + $0x108] ss:$16 sps:$4 sm:$0xff]  }
 0xb52   :  { %4096 = vrcp.f32 %v2374_v44  ;;  %vm2367_vm12 = vcmp.gt.f32.partialorder %v2357_v41, 0.0  ;;  %v4000_v44 = vld [vmem:[#allocation11 + $0x104] ss:$16 sps:$4 sm:$0xff]  }
 0xb53   :  { %v2371_v46 = vsel %vm2367_vm12, %v2357_v41, 1.0  ;;  %v2360_v47 = vpop.xlane.xlu1 %2359  ;;  %v4009_v41 = vld [vmem:[#allocation11 + $0x12c] ss:$16 sps:$4 sm:$0xff]  }
 0xb54   :  { %4098 = vrcp.f32 %v2371_v46  ;;  %vm2368_vm13 = vcmp.gt.f32.partialorder %v2360_v47, 0.0  ;;  %v3998_v46 = vld [vmem:[#allocation11 + $0x100] ss:$16 sps:$4 sm:$0xff]  }
 0xb55   :  { %v2372_v39 = vsel %vm2368_vm13, %v2360_v47, 1.0  ;;  %v4007_v47 = vld [vmem:[#allocation11 + $0x128] ss:$16 sps:$4 sm:$0xff]  }
 0xb56   :  { %4100 = vrcp.f32 %v2372_v39  ;;  %v4006_v39 = vld [vmem:[#allocation11 + $0x124] ss:$16 sps:$4 sm:$0xff]  }
 0xb5a   :  { %v4095_v49 = vpop.eup %4094 }
 0xb5b   :  { %v2381_v51 = vmul.f32 %v4095_v49, %v2353_v19  ;;  %v3976_v19 = vld [vmem:[#allocation11 + $0x84] ss:$16 sps:$4 sm:$0xff]   ;;  %v4015_v49 = vld [vmem:[#allocation11 + $0x14c] ss:$16 sps:$4 sm:$0xff]  }
 0xb5c   :  { %v4097_v50 = vpop.eup %4096 }
 0xb5d   :  { %v2382_v52 = vmul.f32 %v4097_v50, %v2354_v22  ;;  %v3983_v22 = vld [vmem:[#allocation11 + $0xa8] ss:$16 sps:$4 sm:$0xff]   ;;  %v4004_v50 = vld [vmem:[#allocation11 + $0x120] ss:$16 sps:$4 sm:$0xff]  }
 0xb5e   :  { %v4099_v42 = vpop.eup %4098 }
 0xb5f   :  { %v2384_v43 = vpack.c.bf16 %v2382_v52, %v2381_v51  ;;  %v2379_v58 = vmul.f32 %v4099_v42, %v2351_v24  ;;  %v3980_v24 = vld [vmem:[#allocation11 + $0xa0] ss:$16 sps:$4 sm:$0xff]   ;;  %v4013_v51 = vld [vmem:[#allocation11 + $0x148] ss:$16 sps:$4 sm:$0xff]   ;;  %v4012_v52 = vld [vmem:[#allocation11 + $0x144] ss:$16 sps:$4 sm:$0xff]  }
 0xb60   :  { %v4101_v48 = vpop.eup %4100  ;;  %v4021_v42 = vld [vmem:[#allocation11 + $0x16c] ss:$16 sps:$4 sm:$0xff]  }
 0xb61   :  { %v2380_v45 = vmul.f32 %v4101_v48, %v2352_v30  ;;  %3773 = vmatmul.mubr.msk.bf16.vlgmr.msra.gmra.mrb[36].mxu1 %vm862_vm2, %v2384_v43  ;;  %v3997_v30 = vld [vmem:[#allocation11 + $0xec] ss:$16 sps:$4 sm:$0xff]   ;;  %v4019_v43 = vld [vmem:[#allocation11 + $0x168] ss:$16 sps:$4 sm:$0xff]  }
 0xb62   :  { %2933 = vmatpush1.bf16.msra.mxu1 %v3953_v53  ;;  %v4010_v53 = vld [vmem:[#allocation11 + $0x140] ss:$16 sps:$4 sm:$0xff]   ;;  %v4027_v48 = vld [vmem:[#allocation11 + $0x18c] ss:$16 sps:$4 sm:$0xff]  }
 0xb63   :  { %v2383_v60 = vpack.c.bf16 %v2380_v45, %v2379_v58  ;;  %2934 = vmatprep.subr.bf16.mxu1 %v3961_v54  ;;  %v4018_v54 = vld [vmem:[#allocation11 + $0x164] ss:$16 sps:$4 sm:$0xff]   ;;  %v4016_v58 = vld [vmem:[#allocation11 + $0x160] ss:$16 sps:$4 sm:$0xff]   ;;  %v4025_v45 = vld [vmem:[#allocation11 + $0x188] ss:$16 sps:$4 sm:$0xff]  }
 0xb65   :  { %3767 = vmatmul.mubr.msk.bf16.vlgmr.msra.gmra.mrb[36].mxu0 %vm862_vm2, %v2383_v60  ;;  %v4030_v60 = vld [vmem:[#allocation11 + $0x1a4] ss:$16 sps:$4 sm:$0xff]  }
 0xb66   :  { %2890 = vmatpush1.bf16.msra.mxu0 %v3950_v59  ;;  %2935 = vmatpush1.bf16.msra.mxu1 %v3959_v16  ;;  %v4024_v59 = vld [vmem:[#allocation11 + $0x184] ss:$16 sps:$4 sm:$0xff]   ;;  %v4022_v16 = vld [vmem:[#allocation11 + $0x180] ss:$16 sps:$4 sm:$0xff]  }
 0xb67   :  { %2891 = vmatprep.subr.bf16.mxu0 %v3958_v61  ;;  %2936 = vmatprep.subr.bf16.mxu1 %v3967_v62  ;;  %v4033_v61 = vld [vmem:[#allocation11 + $0x1ac] ss:$16 sps:$4 sm:$0xff]   ;;  %v4028_v62 = vld [vmem:[#allocation11 + $0x1a0] ss:$16 sps:$4 sm:$0xff]  }
 0xb6a   :  { %2892 = vmatpush1.bf16.msra.mxu0 %v3956_v63  ;;  %2937 = vmatpush1.bf16.msra.mxu1 %v3965_v2  ;;  %v4031_v63 = vld [vmem:[#allocation11 + $0x1a8] ss:$16 sps:$4 sm:$0xff]   ;;  %v4036_v2 = vld [vmem:[#allocation11 + $0x1c4] ss:$16 sps:$4 sm:$0xff]  }
 0xb6b   :  { %2893 = vmatprep.subr.bf16.mxu0 %v3964_v3  ;;  %2938 = vmatprep.subr.bf16.mxu1 %v3973_v4  ;;  %v4039_v3 = vld [vmem:[#allocation11 + $0x1cc] ss:$16 sps:$4 sm:$0xff]   ;;  %v4034_v4 = vld [vmem:[#allocation11 + $0x1c0] ss:$16 sps:$4 sm:$0xff]  }
 0xb6e   :  { %2894 = vmatpush1.bf16.msra.mxu0 %v3962_v5  ;;  %2939 = vmatpush1.bf16.msra.mxu1 %v3971_v7  ;;  %v4037_v5 = vld [vmem:[#allocation11 + $0x1c8] ss:$16 sps:$4 sm:$0xff]   ;;  %v4042_v7 = vld [vmem:[#allocation11 + $0x1e4] ss:$16 sps:$4 sm:$0xff]  }
 0xb6f   :  { %2895 = vmatprep.subr.bf16.mxu0 %v3970_v14  ;;  %2940 = vmatprep.subr.bf16.mxu1 %v3979_v15  ;;  %v4045_v14 = vld [vmem:[#allocation11 + $0x1ec] ss:$16 sps:$4 sm:$0xff]   ;;  %v4040_v15 = vld [vmem:[#allocation11 + $0x1e0] ss:$16 sps:$4 sm:$0xff]  }
 0xb72   :  { %2896 = vmatpush1.bf16.msra.mxu0 %v3968_v17  ;;  %2941 = vmatpush1.bf16.msra.mxu1 %v3977_v18  ;;  %v4043_v17 = vld [vmem:[#allocation11 + $0x1e8] ss:$16 sps:$4 sm:$0xff]   ;;  %v1734_v18 = vrot.slane %v4710_v55, %v264_v28 }
 0xb73   :  { %2897 = vmatprep.subr.bf16.mxu0 %v3976_v19  ;;  %2942 = vmatprep.subr.bf16.mxu1 %v3985_v20  ;;  %v1730_v19 = vrot.slane %v4710_v55, %v260_v29 }
 0xb74   :  { %v2229_v20 = vadd.f32 %v4734_v31, %v1734_v18 }
 0xb76   :  { %2898 = vmatpush1.bf16.msra.mxu0 %v3974_v21  ;;  %2943 = vmatpush1.bf16.msra.mxu1 %v3983_v22  ;;  %v2233_v22 = vadd.f32 %v4738_v37, %v1734_v18 }
 0xb77   :  { %2899 = vmatprep.subr.bf16.mxu0 %v3982_v0  ;;  %2944 = vmatprep.subr.bf16.mxu1 %v3991_v23 }
 0xb7a   :  { %2900 = vmatpush1.bf16.msra.mxu0 %v3980_v24  ;;  %2945 = vmatpush1.bf16.msra.mxu1 %v3989_v25  ;;  %v2227_v25 = vadd.f32 %v4729_v26, %v1730_v19  ;;  %v4785_v26 = vld [vmem:[%s4871_s10] sm:$0xf] }
 0xb7b   :  { %2901 = vmatprep.subr.bf16.mxu0 %v3988_v27  ;;  %2946 = vmatprep.subr.bf16.mxu1 %v3997_v30 }
 0xb7e   :  { %2902 = vmatpush1.bf16.msra.mxu0 %v3986_v32  ;;  %2947 = vmatpush1.bf16.msra.mxu1 %v3995_v34  ;;  %v2231_v34 = vadd.f32 %v4736_v33, %v1730_v19  ;;  %v2552_v33 = vrot.slane %v4785_v26, %v4557_v9 }
 0xb7f   :  { %2903 = vmatprep.subr.bf16.mxu0 %v3994_v35  ;;  %2948 = vmatprep.subr.bf16.mxu1 %v4003_v36 }
 0xb82   :  { %2904 = vmatpush1.bf16.msra.mxu0 %v3992_v40  ;;  %2949 = vmatpush1.bf16.msra.mxu1 %v4001_v38 }
 0xb83   :  { %2905 = vmatprep.subr.bf16.mxu0 %v4000_v44  ;;  %2950 = vmatprep.subr.bf16.mxu1 %v4009_v41  ;;  %v2560_v41 = vrot.slane %v4785_v26, %v4560_v10 }
 0xb86   :  { %2906 = vmatpush1.bf16.msra.mxu0 %v3998_v46  ;;  %2951 = vmatpush1.bf16.msra.mxu1 %v4007_v47 }
 0xb87   :  { %2907 = vmatprep.subr.bf16.mxu0 %v4006_v39  ;;  %2952 = vmatprep.subr.bf16.mxu1 %v4015_v49  ;;  %v2556_v39 = vrot.slane %v4785_v26, %v4563_v11 }
 0xb8a   :  { %2908 = vmatpush1.bf16.msra.mxu0 %v4004_v50  ;;  %2953 = vmatpush1.bf16.msra.mxu1 %v4013_v51 }
 0xb8b   :  { %2909 = vmatprep.subr.bf16.mxu0 %v4012_v52  ;;  %2954 = vmatprep.subr.bf16.mxu1 %v4021_v42 }
 0xb8e   :  { %2910 = vmatpush1.bf16.msra.mxu0 %v4010_v53  ;;  %2955 = vmatpush1.bf16.msra.mxu1 %v4019_v43 }
 0xb8f   :  { %2911 = vmatprep.subr.bf16.mxu0 %v4018_v54  ;;  %2956 = vmatprep.subr.bf16.mxu1 %v4027_v48 }
 0xb92   :  { %2912 = vmatpush1.bf16.msra.mxu0 %v4016_v58  ;;  %2957 = vmatpush1.bf16.msra.mxu1 %v4025_v45 }
 0xb93   :  { %2913 = vmatprep.subr.bf16.mxu0 %v4024_v59  ;;  %2958 = vmatprep.subr.bf16.mxu1 %v4033_v61 }
 0xb96   :  { %2914 = vmatpush1.bf16.msra.mxu0 %v4022_v16  ;;  %2959 = vmatpush1.bf16.msra.mxu1 %v4031_v63 }
 0xb97   :  { %2915 = vmatprep.subr.bf16.mxu0 %v4030_v60  ;;  %2960 = vmatprep.subr.bf16.mxu1 %v4039_v3 }
 0xb9a   :  { %2916 = vmatpush1.bf16.msra.mxu0 %v4028_v62  ;;  %2961 = vmatpush1.bf16.msra.mxu1 %v4037_v5 }
 0xb9b   :  { %2917 = vmatprep.subr.bf16.mxu0 %v4036_v2  ;;  %2962 = vmatprep.subr.bf16.mxu1 %v4045_v14 }
 0xb9e   :  { %2918 = vmatpush1.bf16.msra.mxu0 %v4034_v4  ;;  %2963 = vmatpush1.bf16.msra.mxu1 %v4043_v17 }
 0xb9f   :  { %2919 = vmatprep.subr.bf16.mxu0 %v4042_v7  ;;  %3782 = vmatprep.subr.bf16.mxu1 %v4339_v6 }
 0xba2   :  { %2920 = vmatpush1.bf16.msra.mxu0 %v4040_v15 }
 0xba3   :  { %3776 = vmatprep.subr.bf16.mxu0 %v4339_v6 }
 0xc34   :  { %v2466_v21 = vpop.f32.mrb[36].mxu1 }
 0xc35   :  { %v2474_v0 = vadd.f32 %v2466_v21, %v2229_v20  ;;  %v3774_v23 = vpop.f32.mrb[37].mxu1 }
 0xc36   :  { %v2469_v24 = vpop.f32.mrb[38].mxu1 }
 0xc37   :  { %v2476_v27 = vadd.f32 %v2469_v24, %v2233_v22  ;;  %v3775_v30 = vpop.f32.mrb[39].mxu1  ;;  %v2478_v28 = vmax.f32 %v2474_v0, 0.0 }
 0xc38   :  { %v2422_v32 = vpop.f32.mrb[36].mxu0 }
 0xc39   :  { %v2480_v35 = vmax.f32 %v2476_v27, 0.0  ;;  %v2473_v8 = vadd.f32 %v2422_v32, %v2227_v25  ;;  %v3768_v36 = vpop.f32.mrb[37].mxu0 }
 0xc3a   :  { %v2425_v29 = vpop.f32.mrb[38].mxu0  ;;  %v4048_v36 = vld [vmem:[#allocation13 + $0x10] sm:$0xff]  }
 0xc3b   :  { %v2547_v55 = vpack.c.bf16 %v2480_v35, %v2478_v28  ;;  %v2475_v31 = vadd.f32 %v2425_v29, %v2231_v34  ;;  %v3769_v40 = vpop.f32.mrb[39].mxu0  ;;  %v2477_v38 = vmax.f32 %v2473_v8, 0.0  ;;  %v4047_v8 = vld [vmem:[#allocation13 + $0x8] sm:$0xff]   ;;  %v4049_v29 = vld [vmem:[#allocation13 + $0x18] sm:$0xff]  }
 0xc3c   :  { %v4052_v40 = vld [vmem:[#allocation13 + $0x30] sm:$0xff]  }
 0xc3d   :  { %v2479_v37 = vmax.f32 %v2475_v31, 0.0  ;;  %2921 = vmatprep.mubr.bf16.mxu0 %v2547_v55  ;;  %2964 = vmatprep.mubr.bf16.mxu1 %v2547_v55  ;;  %v4050_v55 = vld [vmem:[#allocation13 + $0x20] sm:$0xff]   ;;  %v4051_v31 = vld [vmem:[#allocation13 + $0x28] sm:$0xff]  }
 0xc3f   :  { %v2546_v44 = vpack.c.bf16 %v2479_v37, %v2477_v38  ;;  %v2564_v38 = vrot.slane %v4785_v26, %v4571_v13  ;;  %v3134_v13 = vld [vmem:[%s4863_s2] sm:$0x3] }
 0xc41   :  { %2922 = vmatmul.mubr.bf16.vlgmr.msra.gmra.mrb[40].mxu0 %v2546_v44  ;;  %2965 = vmatmul.mubr.bf16.vlgmr.msra.gmra.mrb[40].mxu1 %v2546_v44 }
 0xc42   :  { %3778 = vmatprep.mubr.msk.bf16.mxu0 %vm4340_vm0, %v4339_v6  ;;  %3784 = vmatprep.mubr.msk.bf16.mxu1 %vm4340_vm0, %v4339_v6 }
 0xd14   :  { %v2923_v46 = vpop.f32.mrb[40].mxu0  ;;  %v2966_v47 = vpop.f32.mrb[40].mxu1 }
 0xd15   :  { %v2925_v49 = vpop.f32.mrb[41].mxu0  ;;  %v4793_v50 = vpop.f32.mrb[41].mxu1  ;;  %v2924_v42 = vadd.f32 %v2923_v46, %v2552_v33  ;;  %v2967_v53 = vadd.f32 %v2966_v47, %v2560_v41 }
 0xd16   :  { %v2927_v51 = vpop.f32.mrb[42].mxu0  ;;  %v2970_v52 = vpop.f32.mrb[42].mxu1  ;;  %v2926_v9 = vadd.f32 %v2925_v49, %v2556_v39  ;;  %v2969_v37 = vadd.f32 %v4793_v50, %v2564_v38  ;;  %v3135_v50 = vpack.c.bf16 %v3134_v13, %v3134_v13 }
 0xd17   :  { %v2928_v43 = vadd.f32 %v2927_v51, %v2552_v33  ;;  %v2971_v54 = vadd.f32 %v2970_v52, %v2560_v41  ;;  %v2929_v48 = vpop.f32.mrb[43].mxu0  ;;  %v4795_v58 = vpop.f32.mrb[43].mxu1 }
 0xd18   :  { %v2930_v45 = vadd.f32 %v2929_v48, %v2556_v39  ;;  %v2973_v33 = vadd.f32 %v4795_v58, %v2564_v38  ;;  %v4054_v48 = vld [vmem:[#allocation14] sm:$0xff]   ;;  %v4056_v58 = vld [vmem:[#allocation14 + $0x10] sm:$0xff]  }
 0xd19   :  { %v2975_v10 = vpack.c.bf16 %v2928_v43, %v2924_v42  ;;  %v2977_v59 = vpack.c.bf16 %v2971_v54, %v2967_v53 }
 0xd1a   :  { %v2976_v16 = vpack.c.bf16 %v2930_v45, %v2926_v9  ;;  %v4057_v9 = vld [vmem:[#allocation14 + $0x18] sm:$0xff]   ;;  %v4058_v45 = vld [vmem:[#allocation14 + $0x20] sm:$0xff]  }
 0xd1b   :  { %3783 = vmatpush3.bf16.msra.mxu1 %v2977_v59 }
 0xd1c   :  { %3777 = vmatpush3.bf16.xpose.msra.mxu0 %v2976_v16  ;;  %3794 = vmatprep.subr.bf16.mxu1 %v4339_v6 }
 0xd1d   :  { %3788 = vmatprep.subr.bf16.mxu0 %v4339_v6 }
 0xd23   :  { %3779 = vmatmul.mubr.bf16.vlgmr.msra.gmra.mrb[44].mxu0 %v2975_v10  ;;  %v4059_v10 = vld [vmem:[#allocation14 + $0x28] sm:$0xff]  }
 0xd24   :  { %3790 = vmatprep.mubr.msk.bf16.mxu0 %vm4340_vm0, %v4339_v6 }
 0xdf6   :  { %v3012_v11 = vpop.f32.mrb[44].mxu0 }
 0xdf7   :  { %v3019_v60 = vsel %vm163_vm1, %v3012_v11, -1e+30  ;;  %v3780_v61 = vpop.f32.mrb[45].mxu0 }
 0xdf8   :  { %v3015_v62 = vpop.f32.mrb[46].mxu0  ;;  %v3021_v63 = vsel %vm862_vm2, %v3019_v60, -inf }
 0xdf9   :  { %v3020_v2 = vsel %vm164_vm3, %v3015_v62, -1e+30  ;;  %3022 = vmax.xlane.f32.xlu0 %v3021_v63  ;;  %v3781_v3 = vpop.f32.mrb[47].mxu0  ;;  %v4060_v62 = vld [vmem:[#allocation14 + $0x30] sm:$0xff]   ;;  %v4061_v63 = vld [vmem:[#allocation14 + $0x38] sm:$0xff]  }
 0xdfa   :  { %v3024_v4 = vsel %vm862_vm2, %v3020_v2, -inf }
 0xdfb   :  { %3025 = vmax.xlane.f32.xlu1 %v3024_v4 }
 0xe86   :  { %v3023_v5 = vpop.xlane.xlu0 %3022 }
 0xe87   :  { %v3027_v7 = vsub.f32 %v3019_v60, %v3023_v5 }
 0xe88   :  { %v3026_v14 = vpop.xlane.xlu1 %3025 }
 0xe89   :  { %v3029_v15 = vmul.f32 1.442695, %v3027_v7  ;;  %v3028_v17 = vsub.f32 %v3020_v2, %v3026_v14  ;;  %v3654_v2 = vld [vmem:[%s4873_s12] ss:$0 sm:$0xff]  ;;  %s4288_s12 = scalar_lea.vmem %s3379_s9, 32 }
 0xe8a   :  { %p4289_p8 = scmp.ne.s32.totalorder %s3379_s9, %s4288_s12  ;;  %p4294_p10 = scmp.lt.s32.totalorder %s4288_s12, %s4288_s12 }
 0xe8b   :  { %4102 = vpow2.f32 %v3029_v15  ;;  %v3031_v18 = vmul.f32 1.442695, %v3028_v17 }
 0xe8c   :  { %p4295_p11 = por %p4294_p10, %p4293_p9 }
 0xe8d   :  { %4104 = vpow2.f32 %v3031_v18  ;;  %v3663_v18 = vld [vmem:[%s4875_s14] ss:$0 sm:$0xff] }
 0xe8e   :  { %p4296_p12 = pnand %p4295_p11, %p4289_p8 }
 0xe95   :  { %v4103_v19 = vpop.eup %4102 }
 0xe96   :  { %v3033_v20 = vsel %vm163_vm1, %v4103_v19, 0.0 }
 0xe97   :  { %v4105_v21 = vpop.eup %4104  ;;  %v3035_v22 = vsel %vm862_vm2, %v3033_v20, 0.0 }
 0xe98   :  { %3036 = vadd.xlane.f32.xlu0 %v3035_v22  ;;  %v3034_v0 = vsel %vm164_vm3, %v4105_v21, 0.0 }
 0xe99   :  { %v3038_v23 = vsel %vm862_vm2, %v3034_v0, 0.0 }
 0xe9a   :  { %3039 = vadd.xlane.f32.xlu1 %v3038_v23 }
 0xf25   :  { %v3037_v24 = vpop.xlane.xlu0 %3036 }
 0xf26   :  { %vm3041_vm14 = vcmp.gt.f32.partialorder %v3037_v24, 0.0 }
 0xf27   :  { %v3043_v25 = vsel %vm3041_vm14, %v3037_v24, 1.0  ;;  %v3040_v27 = vpop.xlane.xlu1 %3039 }
 0xf28   :  { %4106 = vrcp.f32 %v3043_v25  ;;  %vm3042_vm15 = vcmp.gt.f32.partialorder %v3040_v27, 0.0 }
 0xf29   :  { %v3044_v30 = vsel %vm3042_vm15, %v3040_v27, 1.0 }
 0xf2a   :  { %4108 = vrcp.f32 %v3044_v30 }
 0xf32   :  { %v4107_v56 = vpop.eup %4106 }
 0xf33   :  { %v3047_v34 = vmul.f32 %v4107_v56, %v3033_v20 }
 0xf34   :  { %v4109_v32 = vpop.eup %4108 }
 0xf35   :  { %v3048_v28 = vmul.f32 %v4109_v32, %v3034_v0 }
 0xf37   :  { %v3049_v35 = vpack.c.bf16 %v3048_v28, %v3047_v34 }
 0xf39   :  { %3785 = vmatmul.mubr.msk.bf16.vlgmr.msra.gmra.mrb[44].mxu1 %vm862_vm2, %v3049_v35 }
 0xf3a   :  { %3810 = vmatprep.mubr.msk.bf16.mxu1 %vm4340_vm0, %v4339_v6  ;;  %3795 = vmatpush3.bf16.msra.mxu1 %v4046_v57 }
 0xf3b   :  { %3796 = vmatprep.subr.bf16.mxu1 %v4339_v6 }
 0xf3e   :  { %3797 = vmatpush3.bf16.msra.mxu1 %v4047_v8 }
 0xf3f   :  { %3798 = vmatprep.subr.bf16.mxu1 %v4339_v6 }
 0xf42   :  { %3799 = vmatpush3.bf16.msra.mxu1 %v4048_v36 }
 0xf43   :  { %3800 = vmatprep.subr.bf16.mxu1 %v4339_v6 }
 0xf46   :  { %3801 = vmatpush3.bf16.msra.mxu1 %v4049_v29 }
 0xf47   :  { %3802 = vmatprep.subr.bf16.mxu1 %v4339_v6 }
 0xf4a   :  { %3803 = vmatpush3.bf16.msra.mxu1 %v4050_v55 }
 0xf4b   :  { %3804 = vmatprep.subr.bf16.mxu1 %v4339_v6 }
 0xf4e   :  { %3805 = vmatpush3.bf16.msra.mxu1 %v4051_v31 }
 0xf4f   :  { %3806 = vmatprep.subr.bf16.mxu1 %v4339_v6 }
 0xf52   :  { %3807 = vmatpush3.bf16.msra.mxu1 %v4052_v40 }
 0xf53   :  { %3808 = vmatprep.subr.bf16.mxu1 %v4339_v6 }
0x100c   :  { %v3087_v44 = vpop.f32.mrb[44].mxu1 }
0x100d   :  { %v3088_v41 = vadd.f32 %v3087_v44, %v2969_v37  ;;  %v3786_v46 = vpop.f32.mrb[45].mxu1 }
0x100e   :  { %v3090_v47 = vpop.f32.mrb[46].mxu1 }
0x100f   :  { %v3094_v39 = vmax.f32 %v3088_v41, 0.0  ;;  %v3091_v49 = vadd.f32 %v3090_v47, %v2973_v33  ;;  %v3787_v51 = vpop.f32.mrb[47].mxu1 }
0x1011   :  { %v3096_v52 = vadd.f32 %v3094_v39, %v4687_v12  ;;  %v3095_v42 = vmax.f32 %v3091_v49, 0.0  ;;  %v4053_v12 = vld [vmem:[#allocation13 + $0x38] sm:$0xff]  }
0x1012   :  { %3809 = vmatpush3.bf16.msra.mxu1 %v4053_v12 }
0x1013   :  { %v3097_v53 = vadd.f32 %v3095_v42, %v4689_v1  ;;  %v3098_v43 = vmul.f32 0.70710677, %v3096_v52  ;;  %v4055_v1 = vld [vmem:[#allocation14 + $0x8] sm:$0xff]  }
0x1015   :  { %v3099_v54 = vmul.f32 0.70710677, %v3097_v53 }
0x1017   :  { %v3136_v26 = vpack.c.bf16 %v3099_v54, %v3098_v43 }
0x1019   :  { %3789 = vmatpush3.bf16.msra.mxu0 %v3136_v26 }
0x101a   :  { %3814 = vmatprep.subr.bf16.mxu0 %v4339_v6 }
0x101c   :  { %3791 = vmatmul.mubr.msk.bf16.vlgmr.msra.gmra.mrb[48].mxu0 %vm862_vm2, %v3135_v50 }
0x101d   :  { %3830 = vmatprep.mubr.msk.bf16.mxu0 %vm4340_vm0, %v4339_v6  ;;  %3815 = vmatpush3.bf16.msra.mxu0 %v4054_v48 }
0x101e   :  { %3816 = vmatprep.subr.bf16.mxu0 %v4339_v6 }
0x1021   :  { %3817 = vmatpush3.bf16.msra.mxu0 %v4055_v1 }
0x1022   :  { %3818 = vmatprep.subr.bf16.mxu0 %v4339_v6 }
0x1025   :  { %3819 = vmatpush3.bf16.msra.mxu0 %v4056_v58 }
0x1026   :  { %3820 = vmatprep.subr.bf16.mxu0 %v4339_v6 }
0x1029   :  { %3821 = vmatpush3.bf16.msra.mxu0 %v4057_v9 }
0x102a   :  { %3822 = vmatprep.subr.bf16.mxu0 %v4339_v6 }
0x102d   :  { %3823 = vmatpush3.bf16.msra.mxu0 %v4058_v45 }
0x102e   :  { %3824 = vmatprep.subr.bf16.mxu0 %v4339_v6 }
0x1031   :  { %3825 = vmatpush3.bf16.msra.mxu0 %v4059_v10 }
0x1032   :  { %3826 = vmatprep.subr.bf16.mxu0 %v4339_v6 }
0x1035   :  { %3827 = vmatpush3.bf16.msra.mxu0 %v4060_v62 }
0x1036   :  { %3828 = vmatprep.subr.bf16.mxu0 %v4339_v6 }
0x1039   :  { %3829 = vmatpush3.bf16.msra.mxu0 %v4061_v63 }
0x10ef   :  { %v3174_v59 = vpop.f32.mrb[48].mxu0 }
0x10f0   :  { %v3180_v16 = vpack.c.bf16 %v3174_v59, %v3174_v59  ;;  %v3792_v11 = vpop.f32.mrb[49].mxu0 }
0x10f1   :  { %v3177_v60 = vpop.f32.mrb[50].mxu0 }
0x10f2   :  { %v3793_v61 = vpop.f32.mrb[51].mxu0  ;;  %3811 = vmatmul.mubr.bf16.vlgmr.msra.gmra.mrb[48].mxu1 %v3180_v16 }
0x11c5   :  { %v3269_v3 = vpop.f32.mrb[48].mxu1 }
0x11c6   :  { %v3270_v4 = vadd.f32 %v3654_v2, %v3269_v3  ;;  %v3812_v5 = vpop.f32.mrb[49].mxu1 }
0x11c7   :  { %v3272_v7 = vpop.f32.mrb[50].mxu1 }
0x11c8   :  { %v3275_v14 = vmax.f32 %v3270_v4, 0.0  ;;  %v3813_v15 = vpop.f32.mrb[51].mxu1 }
0x11ca   :  { %v3276_v17 = vpack.c.bf16 %v3275_v14, %v3275_v14 }
0x11cc   :  { %3831 = vmatmul.mubr.bf16.vlgmr.msra.gmra.mrb[52].mxu0 %v3276_v17 }
0x129f   :  { %v3365_v6 = vpop.f32.mrb[52].mxu0 }
0x12a0   :  { %v3366_v19 = vadd.f32 %v3663_v18, %v3365_v6  ;;  %v3832_v20 = vpop.f32.mrb[53].mxu0 }
0x12a1   :  { %v3368_v21 = vpop.f32.mrb[54].mxu0 }
0x12a2   :  { %3371 = vst [vmem:[#allocation16] sm:$0x3] %v3366_v19  ;;  %v3833_v22 = vpop.f32.mrb[55].mxu0 }
0x12a3   :  { %4299 = shalt.err (!%p4296_p12)
}
0x12a4   :  { %s4300_s14 = scalar_lea.hbm %s4876_s15, 32 }
0x12a5   :  { %p4301_p13 = scmp.ne.s32.totalorder %s4876_s15, %s4300_s14  ;;  %p4304_p0 = scmp.lt.u32.totalorder %s4300_s14, %s4876_s15 }
0x12a7   :  { %p4306_p1 = pnand %p4304_p0, %p4301_p13 }
0x12a9   :  { %4309 = shalt.err (!%p4306_p1)
}
0x12aa   :  { %3381 = dma.vmem_to_hbm [thread:$0]  %s3379_s9, 32, %s4876_s15, [#allocation4]  }
0x12ab   :  { %4320 = dma.done.wait [#allocation4], 32  }
0x12ac   :  { %4321 = vsyncadd [#allocation4], 4294967264 }
0x12ad   :  { %3385 = vsyncpa [#allocation3], 1 }
0x12ae   :  { %3386 = vsyncpa [#allocation6], 1 }
0x12af   :  { %3387 = vsyncpa [#allocation9], 1 }
0x12b0   :  { %3388 = vsyncpa [#allocation12], 1 }
0x12b1   :  { %3389 = vsyncpa [#allocation15], 1 }
0x12b2   :  { %3390 = vsyncpa [#allocation4], 1 }

</bundles_post_ra>
